<compile_context>
chip_gen: v7x
topology: tpu7x:2x2x1
jax: 0.10.0
libtpu: 0.0.40
codegen_flags: <defaults>
</compile_context>

<pallas_src>
import math
from functools import partial

import jax
import jax.numpy as jnp
from jax import lax
from jax.experimental import pallas as pl
from jax.experimental.pallas import tpu as pltpu

_EPS_IOU = 1e-6


def _round_up(x, m):
    return ((x + m - 1) // m) * m


def _sum2(x):
    # (tS, 128) -> (1, 1): lane reduce then sublane reduce.
    return jnp.sum(jnp.sum(x, axis=1, keepdims=True), axis=0, keepdims=True)


# ------------------------------ Pallas kernel ------------------------------- #

def _yolo_loss_kernel(nc, max_gt, ignore_threshold,
                      gt_ref, anch_ref, cnt_ref,        # scalar prefetch (SMEM)
                      pred_ref, aux_ref, cm_ref,        # VMEM inputs
                      out_ref):
    """One (batch, anchor, cell-tile) step of the fused YOLO loss.

    pred_ref: (1, 1, A, tS, 128)  raw logits (attr-major)
    aux_ref : (1, 1, 8, tS, 128)  rows: tx, ty, tw, th, tconf, tcls_idx, noobj0, v(arctan term)
    cm_ref  : (2, tS, 128)        rows: grid_x, grid_y (batch/anchor invariant)
    gt_ref  : SMEM f32 (bs*max_gt*4,)  GT boxes in grid units (x, y, w, h)
    anch_ref: SMEM f32 (na*2,)    scaled anchors (w, h) for this layer
    cnt_ref : SMEM i32 (bs,)      number of valid GTs per image
    out_ref : (1, 1, 1, 8, 128)   partial sums: [loc, n_obj, cls, conf, conf_cnt, 0, 0, 0]
    """
    b = pl.program_id(0)
    a = pl.program_id(1)

    grid_x = cm_ref[0]
    grid_y = cm_ref[1]
    anchor_w = anch_ref[2 * a]
    anchor_h = anch_ref[2 * a + 1]

    # ---- decode predictions (sigmoid x/y, exp(w/h)*anchor) ----
    x = 1.0 / (1.0 + jnp.exp(-pred_ref[0, 0, 0]))
    y = 1.0 / (1.0 + jnp.exp(-pred_ref[0, 0, 1]))
    pw = jnp.exp(pred_ref[0, 0, 2]) * anchor_w
    ph = jnp.exp(pred_ref[0, 0, 3]) * anchor_h
    conf_z = pred_ref[0, 0, 4]                      # objectness logit (BCE in logits form)

    px = x + grid_x
    py = y + grid_y
    p_x1 = px - pw * 0.5
    p_x2 = px + pw * 0.5
    p_y1 = py - ph * 0.5
    p_y2 = py + ph * 0.5
    p_area = pw * ph

    # ---- assigned-target rows ----
    t_x = aux_ref[0, 0, 0]
    t_y = aux_ref[0, 0, 1]
    t_w = aux_ref[0, 0, 2]
    t_h = aux_ref[0, 0, 3]
    t_conf = aux_ref[0, 0, 4]
    t_cls = aux_ref[0, 0, 5]
    noobj0 = aux_ref[0, 0, 6]
    v = aux_ref[0, 0, 7]                            # 4/pi^2 * (atan(pw/ph) - atan(tw/th))^2

    # ---- get_ignore: running max IoU of each pred box over this image's GT boxes ----
    def gt_body(t, best):
        base = (b * max_gt + t) * 4
        gx = gt_ref[base]
        gy = gt_ref[base + 1]
        gw = gt_ref[base + 2]
        gh = gt_ref[base + 3]
        gx1 = gx - gw * 0.5
        gx2 = gx + gw * 0.5
        gy1 = gy - gh * 0.5
        gy2 = gy + gh * 0.5
        iw = jnp.maximum(jnp.minimum(gx2, p_x2) - jnp.maximum(gx1, p_x1), 0.0)
        ih = jnp.maximum(jnp.minimum(gy2, p_y2) - jnp.maximum(gy1, p_y1), 0.0)
        inter = iw * ih
        union = gw * gh + p_area - inter
        iou = inter * pl.reciprocal(jnp.maximum(union, _EPS_IOU), approx=True)
        return jnp.maximum(best, iou)

    best_iou = lax.fori_loop(0, cnt_ref[b], gt_body, jnp.zeros_like(px))
    noobj = noobj0 * (best_iou <= ignore_threshold).astype(jnp.float32)

    # ---- CIoU(pred_box, assigned target box) ----
    t_x1 = t_x - t_w * 0.5
    t_x2 = t_x + t_w * 0.5
    t_y1 = t_y - t_h * 0.5
    t_y2 = t_y + t_h * 0.5

    ciw = jnp.maximum(jnp.minimum(p_x2, t_x2) - jnp.maximum(p_x1, t_x1), 0.0)
    cih = jnp.maximum(jnp.minimum(p_y2, t_y2) - jnp.maximum(p_y1, t_y1), 0.0)
    c_inter = ciw * cih
    c_union = p_area + t_w * t_h - c_inter
    iou = c_inter / jnp.maximum(c_union, _EPS_IOU)

    dxc = px - t_x
    dyc = py - t_y
    center_d = dxc * dxc + dyc * dyc
    e_w = jnp.maximum(jnp.maximum(p_x2, t_x2) - jnp.minimum(p_x1, t_x1), 0.0)
    e_h = jnp.maximum(jnp.maximum(p_y2, t_y2) - jnp.minimum(p_y1, t_y1), 0.0)
    e_diag = e_w * e_w + e_h * e_h
    ciou = iou - center_d / jnp.maximum(e_diag, _EPS_IOU)
    alpha = v / jnp.maximum(1.0 - iou + v, _EPS_IOU)
    ciou = ciou - alpha * v

    not_nan = ciou == ciou                           # ~isnan
    obj_b = jnp.logical_and(t_conf == 1.0, not_nan)
    obj_f = obj_b.astype(jnp.float32)

    loc_sum = _sum2(jnp.where(obj_b, 1.0 - ciou, 0.0))
    n_obj = _sum2(obj_f)

    # ---- class BCE in logits form; one-hot rebuilt on the fly:
    #      sum_c BCE(sigmoid(z_c), onehot_c) == sum_c softplus(z_c) - z_{true class}
    sp_sum = jnp.zeros_like(px)
    z_true = jnp.zeros_like(px)
    for c in range(nc):
        z = pred_ref[0, 0, 5 + c]
        sp_sum = sp_sum + jnp.maximum(z, 0.0) + jnp.log(1.0 + jnp.exp(-jnp.abs(z)))
        z_true = z_true + jnp.where(t_cls == float(c), z, 0.0)
    cls_sum = _sum2(jnp.where(obj_b, sp_sum - z_true, 0.0))

    # ---- objectness BCE (logits form), masked by noobj | obj ----
    conf_bce = (jnp.maximum(conf_z, 0.0) - conf_z * obj_f
                + jnp.log(1.0 + jnp.exp(-jnp.abs(conf_z))))
    conf_m = jnp.logical_or(noobj > 0.0, obj_b)
    conf_sum = _sum2(jnp.where(conf_m, conf_bce, 0.0))
    conf_cnt = _sum2(conf_m.astype(jnp.float32))

    sums = jnp.concatenate(
        [loc_sum, n_obj, cls_sum, conf_sum, conf_cnt,
         jnp.zeros((3, 1), jnp.float32)], axis=0)    # (8, 1)
    out_ref[0, 0, 0] = jnp.broadcast_to(sums, (8, 128))


# ------------------------------- Loss module -------------------------------- #

class YOLOLossPallas:
    def __init__(self, anchors, num_classes, input_shape,
                 anchors_mask=((6, 7, 8), (3, 4, 5), (0, 1, 2)),
                 ignore_threshold=0.5):
        self.anchors = jnp.asarray(anchors, jnp.float32)        # (9, 2) in input pixels
        self.num_classes = num_classes
        self.bbox_attrs = 5 + num_classes
        self.input_shape = input_shape
        self.anchors_mask = [list(m) for m in anchors_mask]
        self.balance = [0.4, 1.0, 4]
        self.box_ratio = 0.05
        self.obj_ratio = 5 * (input_shape[0] * input_shape[1]) / 416 ** 2
        self.cls_ratio = 1 * (num_classes / 80)
        self.ignore_threshold = ignore_threshold

    @staticmethod
    def _pick_tile(S):
        # Minimal padding, tie-break larger tile (tiles are tS x 128 cells).
        best = None
        for t in (32, 24, 16, 8):
            pad = _round_up(S, t)
            if best is None or pad < best[0] or (pad == best[0] and t > best[1]):
                best = (pad, t)
        return best  # (S_pad, tS)

    def __call__(self, l, input_nchw, targets, targets_valid):
        """l: layer index; input_nchw: (bs, na*(5+nc), H, W);
        targets: (bs, MAX_GT, 5) normalized [x, y, w, h, cls] (valid entries packed first);
        targets_valid: (bs, MAX_GT) bool."""
        na = len(self.anchors_mask[l])
        nc = self.num_classes
        A = self.bbox_attrs
        bs, ch, in_h, in_w = input_nchw.shape
        assert ch == na * A

        stride_h = self.input_shape[0] / in_h
        stride_w = self.input_shape[1] / in_w
        scaled_anchors = self.anchors / jnp.asarray([stride_w, stride_h], jnp.float32)
        mask_arr = jnp.asarray(self.anchors_mask[l], jnp.int32)
        sa_l = scaled_anchors[mask_arr]                          # (na, 2)

        HW = in_h * in_w
        S = -(-HW // 128)
        S_pad, tS = self._pick_tile(S)
        ncells = S_pad * 128
        n_s = S_pad // tS
        max_gt = targets.shape[1]

        # ---- pred: free reshape + single pad copy (no transpose) ----
        pred5 = input_nchw.reshape(bs, na, A, HW)
        pred_p = jnp.pad(pred5, ((0, 0), (0, 0), (0, 0), (0, ncells - HW)))
        pred_p = pred_p.reshape(bs, na, A, S_pad, 128)

        # ---- GT boxes in grid units + anchor matching (vs all 9 anchors) ----
        gx = targets[..., 0] * in_w
        gy = targets[..., 1] * in_h
        gw = targets[..., 2] * in_w
        gh = targets[..., 3] * in_h
        gc = jnp.floor(targets[..., 4])                          # class index as float
        valid = targets_valid

        aw9 = scaled_anchors[:, 0][None, None, :]
        ah9 = scaled_anchors[:, 1][None, None, :]
        inter = jnp.minimum(gw[..., None], aw9) * jnp.minimum(gh[..., None], ah9)
        union = gw[..., None] * gh[..., None] + aw9 * ah9 - inter
        best_n = jnp.argmax(inter / union, axis=-1)              # (bs, max_gt)
        in_mask = best_n[..., None] == mask_arr[None, None, :]
        k_arr = jnp.argmax(in_mask, axis=-1).astype(jnp.int32)
        matched = jnp.any(in_mask, axis=-1) & valid

        i_idx = jnp.floor(gx).astype(jnp.int32)
        j_idx = jnp.floor(gy).astype(jnp.int32)
        cell_idx = j_idx * in_w + i_idx

        # ---- get_target: compact y_true (6 rows) + noobj, built attr-major, serial
        #      last-write-wins scatter to match the reference python-loop ordering ----
        lane_valid = (jnp.arange(ncells) < HW).astype(jnp.float32)
        ytc0 = jnp.zeros((bs, na, 6, ncells), jnp.float32)
        noobj0 = jnp.broadcast_to(lane_valid[None, None, :], (bs, na, ncells))

        def scatter_body(idx, carry):
            ytc, nob = carry
            bb = idx // max_gt
            tt = idx % max_gt
            ok = matched[bb, tt]
            k_w = jnp.where(ok, k_arr[bb, tt], na)               # OOB -> dropped
            c_w = jnp.where(ok, cell_idx[bb, tt], ncells)        # OOB -> dropped
            ytc = ytc.at[bb, k_w, 0, c_w].set(gx[bb, tt], mode="drop")
            ytc = ytc.at[bb, k_w, 1, c_w].set(gy[bb, tt], mode="drop")
            ytc = ytc.at[bb, k_w, 2, c_w].set(gw[bb, tt], mode="drop")
            ytc = ytc.at[bb, k_w, 3, c_w].set(gh[bb, tt], mode="drop")
            ytc = ytc.at[bb, k_w, 4, c_w].set(1.0, mode="drop")
            ytc = ytc.at[bb, k_w, 5, c_w].set(gc[bb, tt], mode="drop")
            nob = nob.at[bb, k_w, c_w].set(0.0, mode="drop")
            return ytc, nob

        # TODO(synk): if two GTs land on the same cell the reference accumulates TWO class bits
        #             in the one-hot; the compact class-index keeps only the last one.
        ytc, noobj = lax.fori_loop(0, bs * max_gt, scatter_body, (ytc0, noobj0))

        # ---- CIoU arctan aspect term, precomputed in XLA and streamed as one row ----
        # TODO(synk): arctan has no guaranteed Mosaic lowering, so this small pass (2 pred rows
        #             + 2 target rows) stays in XLA.
        aw_l = sa_l[:, 0].reshape(1, na, 1)
        ah_l = sa_l[:, 1].reshape(1, na, 1)
        pw_x = jnp.exp(pred5[:, :, 2, :]) * aw_l
        ph_x = jnp.exp(pred5[:, :, 3, :]) * ah_l
        atan_p = jnp.arctan(pw_x / jnp.maximum(ph_x, _EPS_IOU))
        atan_p = jnp.pad(atan_p, ((0, 0), (0, 0), (0, ncells - HW)))
        atan_t = jnp.arctan(ytc[:, :, 2, :] / jnp.maximum(ytc[:, :, 3, :], _EPS_IOU))
        da = atan_p - atan_t
        v = (4.0 / (math.pi ** 2)) * da * da                     # (bs, na, ncells)

        aux = jnp.concatenate(
            [ytc, noobj[:, :, None, :], v[:, :, None, :]], axis=2)  # (bs, na, 8, ncells)
        aux = aux.reshape(bs, na, 8, S_pad, 128)

        # ---- batch/anchor-invariant per-cell grid coordinates ----
        cell = jnp.arange(ncells)
        cellmeta = jnp.stack([(cell % in_w).astype(jnp.float32),
                              (cell // in_w).astype(jnp.float32)], axis=0)
        cellmeta = cellmeta.reshape(2, S_pad, 128)

        # ---- SMEM scalar-prefetch data: GT boxes, scaled anchors, per-image GT counts ----
        vf = valid.astype(jnp.float32)[..., None]
        gt_flat = (jnp.stack([gx, gy, gw, gh], axis=-1) * vf).reshape(bs * max_gt * 4)
        anch_flat = sa_l.reshape(na * 2)
        cnt = jnp.sum(valid.astype(jnp.int32), axis=1)           # (bs,)

        kernel = partial(_yolo_loss_kernel, nc, max_gt, self.ignore_threshold)
        partials = pl.pallas_call(
            kernel,
            out_shape=jax.ShapeDtypeStruct((bs, na, n_s, 8, 128), jnp.float32),
            grid_spec=pltpu.PrefetchScalarGridSpec(
                num_scalar_prefetch=3,
                grid=(bs, na, n_s),
                in_specs=[
                    pl.BlockSpec((1, 1, A, tS, 128), lambda b, a, s, *_: (b, a, 0, s, 0)),
                    pl.BlockSpec((1, 1, 8, tS, 128), lambda b, a, s, *_: (b, a, 0, s, 0)),
                    pl.BlockSpec((2, tS, 128), lambda b, a, s, *_: (0, s, 0)),
                ],
                out_specs=pl.BlockSpec((1, 1, 1, 8, 128),
                                       lambda b, a, s, *_: (b, a, s, 0, 0)),
            ),
            compiler_params=pltpu.CompilerParams(
                dimension_semantics=("parallel", "parallel", "parallel")),
        )(gt_flat, anch_flat, cnt, pred_p, aux, cellmeta)

        # ---- tiny scalar combine (XLA) ----
        sums = partials[:, :, :, :, 0].sum(axis=(0, 1, 2))       # (8,)
        loc_sum, n_obj, cls_sum, conf_sum, conf_cnt = (
            sums[0], sums[1], sums[2], sums[3], sums[4])

        has_obj = n_obj > 0.0
        loss_loc = jnp.where(has_obj, loc_sum / jnp.maximum(n_obj, 1.0), 0.0)
        loss_cls = jnp.where(has_obj, cls_sum / jnp.maximum(n_obj * nc, 1.0), 0.0)
        loss_conf = conf_sum / jnp.maximum(conf_cnt, 1.0)
        loss = (loss_loc * self.box_ratio + loss_cls * self.cls_ratio
                + loss_conf * self.balance[l] * self.obj_ratio)
        return loss


# ----------------------------------- Main ------------------------------------ #

if __name__ == "__main__":
    key = jax.random.PRNGKey(0)

    num_classes = 20
    in_h = in_w = 16
    input_shape = (64, 64)
    anchors = [(4, 6), (8, 10), (12, 14), (16, 20), (24, 28), (32, 36),
               (40, 48), (48, 56), (60, 60)]
    bs = 2
    l = 0
    na = 3
    bbox_attrs = 5 + num_classes

    loss_mod = YOLOLossPallas(anchors, num_classes, input_shape)

    # PyTorch-style raw head output: (bs, 3*(5+nc), H, W)
    pred = jax.random.normal(key, (bs, na * bbox_attrs, in_h, in_w), jnp.float32)

    # Padded ground-truth targets (normalized xywh + class) and validity mask (packed first).
    MAX_GT = 8
    targets = jnp.zeros((bs, MAX_GT, 5), jnp.float32)
    targets = targets.at[0, 0].set(jnp.asarray([0.30, 0.40, 0.80, 0.90, 3.0]))
    targets = targets.at[0, 1].set(jnp.asarray([0.70, 0.60, 0.90, 0.85, 7.0]))
    targets = targets.at[0, 2].set(jnp.asarray([0.45, 0.55, 0.50, 0.55, 1.0]))
    targets = targets.at[1, 0].set(jnp.asarray([0.55, 0.35, 0.85, 0.80, 5.0]))
    targets_valid = jnp.zeros((bs, MAX_GT), bool)
    targets_valid = (targets_valid.at[0, 0].set(True).at[0, 1].set(True)
                     .at[0, 2].set(True).at[1, 0].set(True))

    fwd = jax.jit(lambda p, t, v: loss_mod(l, p, t, v))
    loss = fwd(pred, targets, targets_valid)
    jax.block_until_ready(loss)

    assert loss.shape == () and loss.dtype == jnp.float32, (loss.shape, loss.dtype)
    assert bool(jnp.isfinite(loss)), loss
    print("KERNEL_OK")
</pallas_src>

<mosaic_0001>
module attributes {stable_mosaic.version = 11 : i64} {
  func.func @_yolo_loss_kernel(%arg0: i32, %arg1: i32, %arg2: i32, %arg3: memref<64xf32, #tpu.memory_space<smem>>, %arg4: memref<6xf32, #tpu.memory_space<smem>>, %arg5: memref<2xi32, #tpu.memory_space<smem>>, %arg6: memref<1x1x25x8x128xf32, #tpu.memory_space<vmem>>, %arg7: memref<1x1x8x8x128xf32, #tpu.memory_space<vmem>>, %arg8: memref<2x8x128xf32, #tpu.memory_space<vmem>>, %arg9: memref<1x1x1x8x128xf32, #tpu.memory_space<vmem>>) attributes {dimension_semantics = [#tpu.dimension_semantics<parallel>, #tpu.dimension_semantics<parallel>, #tpu.dimension_semantics<parallel>], iteration_bounds = array<i64: 2, 3, 1>, scalar_prefetch = 3 : i64, scratch_operands = 0 : i64, tpu.core_type = #tpu.core_type<tc>, window_params = [{transform_indices = @transform_0, window_bounds = array<i64: 1, 1, 25, 8, 128>}, {transform_indices = @transform_1, window_bounds = array<i64: 1, 1, 8, 8, 128>}, {transform_indices = @transform_2, window_bounds = array<i64: 2, 8, 128>}, {transform_indices = @transform_3, window_bounds = array<i64: 1, 1, 1, 8, 128>}]} {
    %c0 = arith.constant 0 : index
    %c0_0 = arith.constant 0 : index
    %c0_1 = arith.constant 0 : index
    %0 = vector.load %arg8[%c0, %c0_0, %c0_1] : memref<2x8x128xf32, #tpu.memory_space<vmem>>, vector<1x8x128xf32>
    %1 = vector.shape_cast %0 : vector<1x8x128xf32> to vector<8x128xf32>
    %c1 = arith.constant 1 : index
    %c0_2 = arith.constant 0 : index
    %c0_3 = arith.constant 0 : index
    %2 = vector.load %arg8[%c1, %c0_2, %c0_3] : memref<2x8x128xf32, #tpu.memory_space<vmem>>, vector<1x8x128xf32>
    %3 = vector.shape_cast %2 : vector<1x8x128xf32> to vector<8x128xf32>
    %c2_i32 = arith.constant 2 : i32
    %4 = arith.muli %c2_i32, %arg1 : i32
    %5 = arith.index_cast %4 : i32 to index
    %6 = memref.load %arg4[%5] : memref<6xf32, #tpu.memory_space<smem>>
    %c2_i32_4 = arith.constant 2 : i32
    %7 = arith.muli %c2_i32_4, %arg1 : i32
    %c1_i32 = arith.constant 1 : i32
    %8 = arith.addi %7, %c1_i32 : i32
    %9 = arith.index_cast %8 : i32 to index
    %10 = memref.load %arg4[%9] : memref<6xf32, #tpu.memory_space<smem>>
    %c0_5 = arith.constant 0 : index
    %c0_6 = arith.constant 0 : index
    %c0_7 = arith.constant 0 : index
    %c0_8 = arith.constant 0 : index
    %c0_9 = arith.constant 0 : index
    %11 = vector.load %arg6[%c0_5, %c0_6, %c0_7, %c0_8, %c0_9] : memref<1x1x25x8x128xf32, #tpu.memory_space<vmem>>, vector<1x1x1x8x128xf32>
    %12 = vector.shape_cast %11 : vector<1x1x1x8x128xf32> to vector<8x128xf32>
    %cst = arith.constant 0.000000e+00 : f32
    %13 = vector.broadcast %cst : f32 to vector<8x128xf32>
    %14 = arith.subf %13, %12 : vector<8x128xf32>
    %15 = math.exp %14 : vector<8x128xf32>
    %cst_10 = arith.constant 1.000000e+00 : f32
    %16 = vector.broadcast %cst_10 : f32 to vector<8x128xf32>
    %17 = arith.addf %16, %15 : vector<8x128xf32>
    %cst_11 = arith.constant 1.000000e+00 : f32
    %18 = vector.broadcast %cst_11 : f32 to vector<8x128xf32>
    %19 = arith.divf %18, %17 : vector<8x128xf32>
    %c0_12 = arith.constant 0 : index
    %c0_13 = arith.constant 0 : index
    %c1_14 = arith.constant 1 : index
    %c0_15 = arith.constant 0 : index
    %c0_16 = arith.constant 0 : index
    %20 = vector.load %arg6[%c0_12, %c0_13, %c1_14, %c0_15, %c0_16] : memref<1x1x25x8x128xf32, #tpu.memory_space<vmem>>, vector<1x1x1x8x128xf32>
    %21 = vector.shape_cast %20 : vector<1x1x1x8x128xf32> to vector<8x128xf32>
    %cst_17 = arith.constant 0.000000e+00 : f32
    %22 = vector.broadcast %cst_17 : f32 to vector<8x128xf32>
    %23 = arith.subf %22, %21 : vector<8x128xf32>
    %24 = math.exp %23 : vector<8x128xf32>
    %cst_18 = arith.constant 1.000000e+00 : f32
    %25 = vector.broadcast %cst_18 : f32 to vector<8x128xf32>
    %26 = arith.addf %25, %24 : vector<8x128xf32>
    %cst_19 = arith.constant 1.000000e+00 : f32
    %27 = vector.broadcast %cst_19 : f32 to vector<8x128xf32>
    %28 = arith.divf %27, %26 : vector<8x128xf32>
    %c0_20 = arith.constant 0 : index
    %c0_21 = arith.constant 0 : index
    %c2 = arith.constant 2 : index
    %c0_22 = arith.constant 0 : index
    %c0_23 = arith.constant 0 : index
    %29 = vector.load %arg6[%c0_20, %c0_21, %c2, %c0_22, %c0_23] : memref<1x1x25x8x128xf32, #tpu.memory_space<vmem>>, vector<1x1x1x8x128xf32>
    %30 = vector.shape_cast %29 : vector<1x1x1x8x128xf32> to vector<8x128xf32>
    %31 = math.exp %30 : vector<8x128xf32>
    %32 = vector.broadcast %6 : f32 to vector<8x128xf32>
    %33 = arith.mulf %31, %32 : vector<8x128xf32>
    %c0_24 = arith.constant 0 : index
    %c0_25 = arith.constant 0 : index
    %c3 = arith.constant 3 : index
    %c0_26 = arith.constant 0 : index
    %c0_27 = arith.constant 0 : index
    %34 = vector.load %arg6[%c0_24, %c0_25, %c3, %c0_26, %c0_27] : memref<1x1x25x8x128xf32, #tpu.memory_space<vmem>>, vector<1x1x1x8x128xf32>
    %35 = vector.shape_cast %34 : vector<1x1x1x8x128xf32> to vector<8x128xf32>
    %36 = math.exp %35 : vector<8x128xf32>
    %37 = vector.broadcast %10 : f32 to vector<8x128xf32>
    %38 = arith.mulf %36, %37 : vector<8x128xf32>
    %c0_28 = arith.constant 0 : index
    %c0_29 = arith.constant 0 : index
    %c4 = arith.constant 4 : index
    %c0_30 = arith.constant 0 : index
    %c0_31 = arith.constant 0 : index
    %39 = vector.load %arg6[%c0_28, %c0_29, %c4, %c0_30, %c0_31] : memref<1x1x25x8x128xf32, #tpu.memory_space<vmem>>, vector<1x1x1x8x128xf32>
    %40 = vector.shape_cast %39 : vector<1x1x1x8x128xf32> to vector<8x128xf32>
    %41 = arith.addf %19, %1 : vector<8x128xf32>
    %42 = arith.addf %28, %3 : vector<8x128xf32>
    %cst_32 = arith.constant 5.000000e-01 : f32
    %43 = vector.broadcast %cst_32 : f32 to vector<8x128xf32>
    %44 = arith.mulf %33, %43 : vector<8x128xf32>
    %45 = arith.subf %41, %44 : vector<8x128xf32>
    %cst_33 = arith.constant 5.000000e-01 : f32
    %46 = vector.broadcast %cst_33 : f32 to vector<8x128xf32>
    %47 = arith.mulf %33, %46 : vector<8x128xf32>
    %48 = arith.addf %41, %47 : vector<8x128xf32>
    %cst_34 = arith.constant 5.000000e-01 : f32
    %49 = vector.broadcast %cst_34 : f32 to vector<8x128xf32>
    %50 = arith.mulf %38, %49 : vector<8x128xf32>
    %51 = arith.subf %42, %50 : vector<8x128xf32>
    %cst_35 = arith.constant 5.000000e-01 : f32
    %52 = vector.broadcast %cst_35 : f32 to vector<8x128xf32>
    %53 = arith.mulf %38, %52 : vector<8x128xf32>
    %54 = arith.addf %42, %53 : vector<8x128xf32>
    %55 = arith.mulf %33, %38 : vector<8x128xf32>
    %c0_36 = arith.constant 0 : index
    %c0_37 = arith.constant 0 : index
    %c0_38 = arith.constant 0 : index
    %c0_39 = arith.constant 0 : index
    %c0_40 = arith.constant 0 : index
    %56 = vector.load %arg7[%c0_36, %c0_37, %c0_38, %c0_39, %c0_40] : memref<1x1x8x8x128xf32, #tpu.memory_space<vmem>>, vector<1x1x1x8x128xf32>
    %57 = vector.shape_cast %56 : vector<1x1x1x8x128xf32> to vector<8x128xf32>
    %c0_41 = arith.constant 0 : index
    %c0_42 = arith.constant 0 : index
    %c1_43 = arith.constant 1 : index
    %c0_44 = arith.constant 0 : index
    %c0_45 = arith.constant 0 : index
    %58 = vector.load %arg7[%c0_41, %c0_42, %c1_43, %c0_44, %c0_45] : memref<1x1x8x8x128xf32, #tpu.memory_space<vmem>>, vector<1x1x1x8x128xf32>
    %59 = vector.shape_cast %58 : vector<1x1x1x8x128xf32> to vector<8x128xf32>
    %c0_46 = arith.constant 0 : index
    %c0_47 = arith.constant 0 : index
    %c2_48 = arith.constant 2 : index
    %c0_49 = arith.constant 0 : index
    %c0_50 = arith.constant 0 : index
    %60 = vector.load %arg7[%c0_46, %c0_47, %c2_48, %c0_49, %c0_50] : memref<1x1x8x8x128xf32, #tpu.memory_space<vmem>>, vector<1x1x1x8x128xf32>
    %61 = vector.shape_cast %60 : vector<1x1x1x8x128xf32> to vector<8x128xf32>
    %c0_51 = arith.constant 0 : index
    %c0_52 = arith.constant 0 : index
    %c3_53 = arith.constant 3 : index
    %c0_54 = arith.constant 0 : index
    %c0_55 = arith.constant 0 : index
    %62 = vector.load %arg7[%c0_51, %c0_52, %c3_53, %c0_54, %c0_55] : memref<1x1x8x8x128xf32, #tpu.memory_space<vmem>>, vector<1x1x1x8x128xf32>
    %63 = vector.shape_cast %62 : vector<1x1x1x8x128xf32> to vector<8x128xf32>
    %c0_56 = arith.constant 0 : index
    %c0_57 = arith.constant 0 : index
    %c4_58 = arith.constant 4 : index
    %c0_59 = arith.constant 0 : index
    %c0_60 = arith.constant 0 : index
    %64 = vector.load %arg7[%c0_56, %c0_57, %c4_58, %c0_59, %c0_60] : memref<1x1x8x8x128xf32, #tpu.memory_space<vmem>>, vector<1x1x1x8x128xf32>
    %65 = vector.shape_cast %64 : vector<1x1x1x8x128xf32> to vector<8x128xf32>
    %c0_61 = arith.constant 0 : index
    %c0_62 = arith.constant 0 : index
    %c5 = arith.constant 5 : index
    %c0_63 = arith.constant 0 : index
    %c0_64 = arith.constant 0 : index
    %66 = vector.load %arg7[%c0_61, %c0_62, %c5, %c0_63, %c0_64] : memref<1x1x8x8x128xf32, #tpu.memory_space<vmem>>, vector<1x1x1x8x128xf32>
    %67 = vector.shape_cast %66 : vector<1x1x1x8x128xf32> to vector<8x128xf32>
    %c0_65 = arith.constant 0 : index
    %c0_66 = arith.constant 0 : index
    %c6 = arith.constant 6 : index
    %c0_67 = arith.constant 0 : index
    %c0_68 = arith.constant 0 : index
    %68 = vector.load %arg7[%c0_65, %c0_66, %c6, %c0_67, %c0_68] : memref<1x1x8x8x128xf32, #tpu.memory_space<vmem>>, vector<1x1x1x8x128xf32>
    %69 = vector.shape_cast %68 : vector<1x1x1x8x128xf32> to vector<8x128xf32>
    %c0_69 = arith.constant 0 : index
    %c0_70 = arith.constant 0 : index
    %c7 = arith.constant 7 : index
    %c0_71 = arith.constant 0 : index
    %c0_72 = arith.constant 0 : index
    %70 = vector.load %arg7[%c0_69, %c0_70, %c7, %c0_71, %c0_72] : memref<1x1x8x8x128xf32, #tpu.memory_space<vmem>>, vector<1x1x1x8x128xf32>
    %71 = vector.shape_cast %70 : vector<1x1x1x8x128xf32> to vector<8x128xf32>
    %72 = arith.index_cast %arg0 : i32 to index
    %73 = memref.load %arg5[%72] : memref<2xi32, #tpu.memory_space<smem>>
    %cst_73 = arith.constant 0.000000e+00 : f32
    %74 = vector.broadcast %cst_73 : f32 to vector<8x128xf32>
    %c0_i32 = arith.constant 0 : i32
    %75 = arith.subi %73, %c0_i32 : i32
    %76 = arith.addi %c0_i32, %75 : i32
    %c1_i32_74 = arith.constant 1 : i32
    %77 = scf.for %arg10 = %c0_i32 to %76 step %c1_i32_74 iter_args(%arg11 = %74) -> (vector<8x128xf32>)  : i32 {
      %c8_i32 = arith.constant 8 : i32
      %563 = arith.muli %arg0, %c8_i32 : i32
      %564 = arith.addi %563, %arg10 : i32
      %c4_i32 = arith.constant 4 : i32
      %565 = arith.muli %564, %c4_i32 : i32
      %566 = arith.index_cast %565 : i32 to index
      %567 = memref.load %arg3[%566] : memref<64xf32, #tpu.memory_space<smem>>
      %c1_i32_298 = arith.constant 1 : i32
      %568 = arith.addi %565, %c1_i32_298 : i32
      %569 = arith.index_cast %568 : i32 to index
      %570 = memref.load %arg3[%569] : memref<64xf32, #tpu.memory_space<smem>>
      %c2_i32_299 = arith.constant 2 : i32
      %571 = arith.addi %565, %c2_i32_299 : i32
      %572 = arith.index_cast %571 : i32 to index
      %573 = memref.load %arg3[%572] : memref<64xf32, #tpu.memory_space<smem>>
      %c3_i32 = arith.constant 3 : i32
      %574 = arith.addi %565, %c3_i32 : i32
      %575 = arith.index_cast %574 : i32 to index
      %576 = memref.load %arg3[%575] : memref<64xf32, #tpu.memory_space<smem>>
      %cst_300 = arith.constant 5.000000e-01 : f32
      %577 = arith.mulf %573, %cst_300 : f32
      %578 = arith.subf %567, %577 : f32
      %cst_301 = arith.constant 5.000000e-01 : f32
      %579 = arith.mulf %573, %cst_301 : f32
      %580 = arith.addf %567, %579 : f32
      %cst_302 = arith.constant 5.000000e-01 : f32
      %581 = arith.mulf %576, %cst_302 : f32
      %582 = arith.subf %570, %581 : f32
      %cst_303 = arith.constant 5.000000e-01 : f32
      %583 = arith.mulf %576, %cst_303 : f32
      %584 = arith.addf %570, %583 : f32
      %585 = vector.broadcast %580 : f32 to vector<8x128xf32>
      %586 = arith.minimumf %585, %48 : vector<8x128xf32>
      %587 = vector.broadcast %578 : f32 to vector<8x128xf32>
      %588 = arith.maximumf %587, %45 : vector<8x128xf32>
      %589 = arith.subf %586, %588 : vector<8x128xf32>
      %cst_304 = arith.constant 0.000000e+00 : f32
      %590 = vector.broadcast %cst_304 : f32 to vector<8x128xf32>
      %591 = arith.maximumf %589, %590 : vector<8x128xf32>
      %592 = vector.broadcast %584 : f32 to vector<8x128xf32>
      %593 = arith.minimumf %592, %54 : vector<8x128xf32>
      %594 = vector.broadcast %582 : f32 to vector<8x128xf32>
      %595 = arith.maximumf %594, %51 : vector<8x128xf32>
      %596 = arith.subf %593, %595 : vector<8x128xf32>
      %cst_305 = arith.constant 0.000000e+00 : f32
      %597 = vector.broadcast %cst_305 : f32 to vector<8x128xf32>
      %598 = arith.maximumf %596, %597 : vector<8x128xf32>
      %599 = arith.mulf %591, %598 : vector<8x128xf32>
      %600 = arith.mulf %573, %576 : f32
      %601 = vector.broadcast %600 : f32 to vector<8x128xf32>
      %602 = arith.addf %601, %55 : vector<8x128xf32>
      %603 = arith.subf %602, %599 : vector<8x128xf32>
      %cst_306 = arith.constant 9.99999997E-7 : f32
      %604 = vector.broadcast %cst_306 : f32 to vector<8x128xf32>
      %605 = arith.maximumf %603, %604 : vector<8x128xf32>
      %606 = tpu.reciprocal %605 {approx = true} : vector<8x128xf32> -> vector<8x128xf32>
      %607 = arith.mulf %599, %606 : vector<8x128xf32>
      %608 = arith.maximumf %arg11, %607 : vector<8x128xf32>
      scf.yield %608 : vector<8x128xf32>
    }
    %cst_75 = arith.constant 5.000000e-01 : f32
    %78 = vector.broadcast %cst_75 : f32 to vector<8x128xf32>
    %79 = arith.cmpf ole, %77, %78 : vector<8x128xf32>
    %80 = arith.extui %79 : vector<8x128xi1> to vector<8x128xi32>
    %81 = arith.sitofp %80 : vector<8x128xi32> to vector<8x128xf32>
    %82 = arith.mulf %69, %81 : vector<8x128xf32>
    %cst_76 = arith.constant 5.000000e-01 : f32
    %83 = vector.broadcast %cst_76 : f32 to vector<8x128xf32>
    %84 = arith.mulf %61, %83 : vector<8x128xf32>
    %85 = arith.subf %57, %84 : vector<8x128xf32>
    %cst_77 = arith.constant 5.000000e-01 : f32
    %86 = vector.broadcast %cst_77 : f32 to vector<8x128xf32>
    %87 = arith.mulf %61, %86 : vector<8x128xf32>
    %88 = arith.addf %57, %87 : vector<8x128xf32>
    %cst_78 = arith.constant 5.000000e-01 : f32
    %89 = vector.broadcast %cst_78 : f32 to vector<8x128xf32>
    %90 = arith.mulf %63, %89 : vector<8x128xf32>
    %91 = arith.subf %59, %90 : vector<8x128xf32>
    %cst_79 = arith.constant 5.000000e-01 : f32
    %92 = vector.broadcast %cst_79 : f32 to vector<8x128xf32>
    %93 = arith.mulf %63, %92 : vector<8x128xf32>
    %94 = arith.addf %59, %93 : vector<8x128xf32>
    %95 = arith.minimumf %48, %88 : vector<8x128xf32>
    %96 = arith.maximumf %45, %85 : vector<8x128xf32>
    %97 = arith.subf %95, %96 : vector<8x128xf32>
    %cst_80 = arith.constant 0.000000e+00 : f32
    %98 = vector.broadcast %cst_80 : f32 to vector<8x128xf32>
    %99 = arith.maximumf %97, %98 : vector<8x128xf32>
    %100 = arith.minimumf %54, %94 : vector<8x128xf32>
    %101 = arith.maximumf %51, %91 : vector<8x128xf32>
    %102 = arith.subf %100, %101 : vector<8x128xf32>
    %cst_81 = arith.constant 0.000000e+00 : f32
    %103 = vector.broadcast %cst_81 : f32 to vector<8x128xf32>
    %104 = arith.maximumf %102, %103 : vector<8x128xf32>
    %105 = arith.mulf %99, %104 : vector<8x128xf32>
    %106 = arith.mulf %61, %63 : vector<8x128xf32>
    %107 = arith.addf %55, %106 : vector<8x128xf32>
    %108 = arith.subf %107, %105 : vector<8x128xf32>
    %cst_82 = arith.constant 9.99999997E-7 : f32
    %109 = vector.broadcast %cst_82 : f32 to vector<8x128xf32>
    %110 = arith.maximumf %108, %109 : vector<8x128xf32>
    %111 = arith.divf %105, %110 : vector<8x128xf32>
    %112 = arith.subf %41, %57 : vector<8x128xf32>
    %113 = arith.subf %42, %59 : vector<8x128xf32>
    %114 = arith.mulf %112, %112 : vector<8x128xf32>
    %115 = arith.mulf %113, %113 : vector<8x128xf32>
    %116 = arith.addf %114, %115 : vector<8x128xf32>
    %117 = arith.maximumf %48, %88 : vector<8x128xf32>
    %118 = arith.minimumf %45, %85 : vector<8x128xf32>
    %119 = arith.subf %117, %118 : vector<8x128xf32>
    %cst_83 = arith.constant 0.000000e+00 : f32
    %120 = vector.broadcast %cst_83 : f32 to vector<8x128xf32>
    %121 = arith.maximumf %119, %120 : vector<8x128xf32>
    %122 = arith.maximumf %54, %94 : vector<8x128xf32>
    %123 = arith.minimumf %51, %91 : vector<8x128xf32>
    %124 = arith.subf %122, %123 : vector<8x128xf32>
    %cst_84 = arith.constant 0.000000e+00 : f32
    %125 = vector.broadcast %cst_84 : f32 to vector<8x128xf32>
    %126 = arith.maximumf %124, %125 : vector<8x128xf32>
    %127 = arith.mulf %121, %121 : vector<8x128xf32>
    %128 = arith.mulf %126, %126 : vector<8x128xf32>
    %129 = arith.addf %127, %128 : vector<8x128xf32>
    %cst_85 = arith.constant 9.99999997E-7 : f32
    %130 = vector.broadcast %cst_85 : f32 to vector<8x128xf32>
    %131 = arith.maximumf %129, %130 : vector<8x128xf32>
    %132 = arith.divf %116, %131 : vector<8x128xf32>
    %133 = arith.subf %111, %132 : vector<8x128xf32>
    %cst_86 = arith.constant 1.000000e+00 : f32
    %134 = vector.broadcast %cst_86 : f32 to vector<8x128xf32>
    %135 = arith.subf %134, %111 : vector<8x128xf32>
    %136 = arith.addf %135, %71 : vector<8x128xf32>
    %cst_87 = arith.constant 9.99999997E-7 : f32
    %137 = vector.broadcast %cst_87 : f32 to vector<8x128xf32>
    %138 = arith.maximumf %136, %137 : vector<8x128xf32>
    %139 = arith.divf %71, %138 : vector<8x128xf32>
    %140 = arith.mulf %139, %71 : vector<8x128xf32>
    %141 = arith.subf %133, %140 : vector<8x128xf32>
    %142 = arith.cmpf oeq, %141, %141 : vector<8x128xf32>
    %cst_88 = arith.constant 1.000000e+00 : f32
    %143 = vector.broadcast %cst_88 : f32 to vector<8x128xf32>
    %144 = arith.cmpf oeq, %65, %143 : vector<8x128xf32>
    %145 = arith.andi %144, %142 : vector<8x128xi1>
    %146 = arith.extui %145 : vector<8x128xi1> to vector<8x128xi32>
    %147 = arith.sitofp %146 : vector<8x128xi32> to vector<8x128xf32>
    %cst_89 = arith.constant 1.000000e+00 : f32
    %148 = vector.broadcast %cst_89 : f32 to vector<8x128xf32>
    %149 = arith.subf %148, %141 : vector<8x128xf32>
    %cst_90 = arith.constant 0.000000e+00 : f32
    %150 = vector.broadcast %cst_90 : f32 to vector<8x128xf32>
    %151 = arith.select %145, %149, %150 : vector<8x128xi1>, vector<8x128xf32>
    %cst_91 = arith.constant dense<0.000000e+00> : vector<8xf32>
    %152 = vector.multi_reduction <add>, %151, %cst_91 [1] : vector<8x128xf32> to vector<8xf32>
    %153 = vector.shape_cast %152 : vector<8xf32> to vector<8x1xf32>
    %cst_92 = arith.constant dense<0.000000e+00> : vector<1xf32>
    %154 = vector.multi_reduction <add>, %153, %cst_92 [0] : vector<8x1xf32> to vector<1xf32>
    %155 = vector.shape_cast %154 : vector<1xf32> to vector<1x1xf32>
    %cst_93 = arith.constant dense<0.000000e+00> : vector<8xf32>
    %156 = vector.multi_reduction <add>, %147, %cst_93 [1] : vector<8x128xf32> to vector<8xf32>
    %157 = vector.shape_cast %156 : vector<8xf32> to vector<8x1xf32>
    %cst_94 = arith.constant dense<0.000000e+00> : vector<1xf32>
    %158 = vector.multi_reduction <add>, %157, %cst_94 [0] : vector<8x1xf32> to vector<1xf32>
    %159 = vector.shape_cast %158 : vector<1xf32> to vector<1x1xf32>
    %cst_95 = arith.constant 0.000000e+00 : f32
    %160 = vector.broadcast %cst_95 : f32 to vector<8x128xf32>
    %cst_96 = arith.constant 0.000000e+00 : f32
    %161 = vector.broadcast %cst_96 : f32 to vector<8x128xf32>
    %c0_97 = arith.constant 0 : index
    %c0_98 = arith.constant 0 : index
    %c5_99 = arith.constant 5 : index
    %c0_100 = arith.constant 0 : index
    %c0_101 = arith.constant 0 : index
    %162 = vector.load %arg6[%c0_97, %c0_98, %c5_99, %c0_100, %c0_101] : memref<1x1x25x8x128xf32, #tpu.memory_space<vmem>>, vector<1x1x1x8x128xf32>
    %163 = vector.shape_cast %162 : vector<1x1x1x8x128xf32> to vector<8x128xf32>
    %cst_102 = arith.constant 0.000000e+00 : f32
    %164 = vector.broadcast %cst_102 : f32 to vector<8x128xf32>
    %165 = arith.maximumf %163, %164 : vector<8x128xf32>
    %166 = arith.addf %160, %165 : vector<8x128xf32>
    %167 = math.absf %163 : vector<8x128xf32>
    %cst_103 = arith.constant 0.000000e+00 : f32
    %168 = vector.broadcast %cst_103 : f32 to vector<8x128xf32>
    %169 = arith.subf %168, %167 : vector<8x128xf32>
    %170 = math.exp %169 : vector<8x128xf32>
    %cst_104 = arith.constant 1.000000e+00 : f32
    %171 = vector.broadcast %cst_104 : f32 to vector<8x128xf32>
    %172 = arith.addf %171, %170 : vector<8x128xf32>
    %173 = math.log %172 : vector<8x128xf32>
    %174 = arith.addf %166, %173 : vector<8x128xf32>
    %cst_105 = arith.constant 0.000000e+00 : f32
    %175 = vector.broadcast %cst_105 : f32 to vector<8x128xf32>
    %176 = arith.cmpf oeq, %67, %175 : vector<8x128xf32>
    %cst_106 = arith.constant 0.000000e+00 : f32
    %177 = vector.broadcast %cst_106 : f32 to vector<8x128xf32>
    %178 = arith.select %176, %163, %177 : vector<8x128xi1>, vector<8x128xf32>
    %179 = arith.addf %161, %178 : vector<8x128xf32>
    %c0_107 = arith.constant 0 : index
    %c0_108 = arith.constant 0 : index
    %c6_109 = arith.constant 6 : index
    %c0_110 = arith.constant 0 : index
    %c0_111 = arith.constant 0 : index
    %180 = vector.load %arg6[%c0_107, %c0_108, %c6_109, %c0_110, %c0_111] : memref<1x1x25x8x128xf32, #tpu.memory_space<vmem>>, vector<1x1x1x8x128xf32>
    %181 = vector.shape_cast %180 : vector<1x1x1x8x128xf32> to vector<8x128xf32>
    %cst_112 = arith.constant 0.000000e+00 : f32
    %182 = vector.broadcast %cst_112 : f32 to vector<8x128xf32>
    %183 = arith.maximumf %181, %182 : vector<8x128xf32>
    %184 = arith.addf %174, %183 : vector<8x128xf32>
    %185 = math.absf %181 : vector<8x128xf32>
    %cst_113 = arith.constant 0.000000e+00 : f32
    %186 = vector.broadcast %cst_113 : f32 to vector<8x128xf32>
    %187 = arith.subf %186, %185 : vector<8x128xf32>
    %188 = math.exp %187 : vector<8x128xf32>
    %cst_114 = arith.constant 1.000000e+00 : f32
    %189 = vector.broadcast %cst_114 : f32 to vector<8x128xf32>
    %190 = arith.addf %189, %188 : vector<8x128xf32>
    %191 = math.log %190 : vector<8x128xf32>
    %192 = arith.addf %184, %191 : vector<8x128xf32>
    %cst_115 = arith.constant 1.000000e+00 : f32
    %193 = vector.broadcast %cst_115 : f32 to vector<8x128xf32>
    %194 = arith.cmpf oeq, %67, %193 : vector<8x128xf32>
    %cst_116 = arith.constant 0.000000e+00 : f32
    %195 = vector.broadcast %cst_116 : f32 to vector<8x128xf32>
    %196 = arith.select %194, %181, %195 : vector<8x128xi1>, vector<8x128xf32>
    %197 = arith.addf %179, %196 : vector<8x128xf32>
    %c0_117 = arith.constant 0 : index
    %c0_118 = arith.constant 0 : index
    %c7_119 = arith.constant 7 : index
    %c0_120 = arith.constant 0 : index
    %c0_121 = arith.constant 0 : index
    %198 = vector.load %arg6[%c0_117, %c0_118, %c7_119, %c0_120, %c0_121] : memref<1x1x25x8x128xf32, #tpu.memory_space<vmem>>, vector<1x1x1x8x128xf32>
    %199 = vector.shape_cast %198 : vector<1x1x1x8x128xf32> to vector<8x128xf32>
    %cst_122 = arith.constant 0.000000e+00 : f32
    %200 = vector.broadcast %cst_122 : f32 to vector<8x128xf32>
    %201 = arith.maximumf %199, %200 : vector<8x128xf32>
    %202 = arith.addf %192, %201 : vector<8x128xf32>
    %203 = math.absf %199 : vector<8x128xf32>
    %cst_123 = arith.constant 0.000000e+00 : f32
    %204 = vector.broadcast %cst_123 : f32 to vector<8x128xf32>
    %205 = arith.subf %204, %203 : vector<8x128xf32>
    %206 = math.exp %205 : vector<8x128xf32>
    %cst_124 = arith.constant 1.000000e+00 : f32
    %207 = vector.broadcast %cst_124 : f32 to vector<8x128xf32>
    %208 = arith.addf %207, %206 : vector<8x128xf32>
    %209 = math.log %208 : vector<8x128xf32>
    %210 = arith.addf %202, %209 : vector<8x128xf32>
    %cst_125 = arith.constant 2.000000e+00 : f32
    %211 = vector.broadcast %cst_125 : f32 to vector<8x128xf32>
    %212 = arith.cmpf oeq, %67, %211 : vector<8x128xf32>
    %cst_126 = arith.constant 0.000000e+00 : f32
    %213 = vector.broadcast %cst_126 : f32 to vector<8x128xf32>
    %214 = arith.select %212, %199, %213 : vector<8x128xi1>, vector<8x128xf32>
    %215 = arith.addf %197, %214 : vector<8x128xf32>
    %c0_127 = arith.constant 0 : index
    %c0_128 = arith.constant 0 : index
    %c8 = arith.constant 8 : index
    %c0_129 = arith.constant 0 : index
    %c0_130 = arith.constant 0 : index
    %216 = vector.load %arg6[%c0_127, %c0_128, %c8, %c0_129, %c0_130] : memref<1x1x25x8x128xf32, #tpu.memory_space<vmem>>, vector<1x1x1x8x128xf32>
    %217 = vector.shape_cast %216 : vector<1x1x1x8x128xf32> to vector<8x128xf32>
    %cst_131 = arith.constant 0.000000e+00 : f32
    %218 = vector.broadcast %cst_131 : f32 to vector<8x128xf32>
    %219 = arith.maximumf %217, %218 : vector<8x128xf32>
    %220 = arith.addf %210, %219 : vector<8x128xf32>
    %221 = math.absf %217 : vector<8x128xf32>
    %cst_132 = arith.constant 0.000000e+00 : f32
    %222 = vector.broadcast %cst_132 : f32 to vector<8x128xf32>
    %223 = arith.subf %222, %221 : vector<8x128xf32>
    %224 = math.exp %223 : vector<8x128xf32>
    %cst_133 = arith.constant 1.000000e+00 : f32
    %225 = vector.broadcast %cst_133 : f32 to vector<8x128xf32>
    %226 = arith.addf %225, %224 : vector<8x128xf32>
    %227 = math.log %226 : vector<8x128xf32>
    %228 = arith.addf %220, %227 : vector<8x128xf32>
    %cst_134 = arith.constant 3.000000e+00 : f32
    %229 = vector.broadcast %cst_134 : f32 to vector<8x128xf32>
    %230 = arith.cmpf oeq, %67, %229 : vector<8x128xf32>
    %cst_135 = arith.constant 0.000000e+00 : f32
    %231 = vector.broadcast %cst_135 : f32 to vector<8x128xf32>
    %232 = arith.select %230, %217, %231 : vector<8x128xi1>, vector<8x128xf32>
    %233 = arith.addf %215, %232 : vector<8x128xf32>
    %c0_136 = arith.constant 0 : index
    %c0_137 = arith.constant 0 : index
    %c9 = arith.constant 9 : index
    %c0_138 = arith.constant 0 : index
    %c0_139 = arith.constant 0 : index
    %234 = vector.load %arg6[%c0_136, %c0_137, %c9, %c0_138, %c0_139] : memref<1x1x25x8x128xf32, #tpu.memory_space<vmem>>, vector<1x1x1x8x128xf32>
    %235 = vector.shape_cast %234 : vector<1x1x1x8x128xf32> to vector<8x128xf32>
    %cst_140 = arith.constant 0.000000e+00 : f32
    %236 = vector.broadcast %cst_140 : f32 to vector<8x128xf32>
    %237 = arith.maximumf %235, %236 : vector<8x128xf32>
    %238 = arith.addf %228, %237 : vector<8x128xf32>
    %239 = math.absf %235 : vector<8x128xf32>
    %cst_141 = arith.constant 0.000000e+00 : f32
    %240 = vector.broadcast %cst_141 : f32 to vector<8x128xf32>
    %241 = arith.subf %240, %239 : vector<8x128xf32>
    %242 = math.exp %241 : vector<8x128xf32>
    %cst_142 = arith.constant 1.000000e+00 : f32
    %243 = vector.broadcast %cst_142 : f32 to vector<8x128xf32>
    %244 = arith.addf %243, %242 : vector<8x128xf32>
    %245 = math.log %244 : vector<8x128xf32>
    %246 = arith.addf %238, %245 : vector<8x128xf32>
    %cst_143 = arith.constant 4.000000e+00 : f32
    %247 = vector.broadcast %cst_143 : f32 to vector<8x128xf32>
    %248 = arith.cmpf oeq, %67, %247 : vector<8x128xf32>
    %cst_144 = arith.constant 0.000000e+00 : f32
    %249 = vector.broadcast %cst_144 : f32 to vector<8x128xf32>
    %250 = arith.select %248, %235, %249 : vector<8x128xi1>, vector<8x128xf32>
    %251 = arith.addf %233, %250 : vector<8x128xf32>
    %c0_145 = arith.constant 0 : index
    %c0_146 = arith.constant 0 : index
    %c10 = arith.constant 10 : index
    %c0_147 = arith.constant 0 : index
    %c0_148 = arith.constant 0 : index
    %252 = vector.load %arg6[%c0_145, %c0_146, %c10, %c0_147, %c0_148] : memref<1x1x25x8x128xf32, #tpu.memory_space<vmem>>, vector<1x1x1x8x128xf32>
    %253 = vector.shape_cast %252 : vector<1x1x1x8x128xf32> to vector<8x128xf32>
    %cst_149 = arith.constant 0.000000e+00 : f32
    %254 = vector.broadcast %cst_149 : f32 to vector<8x128xf32>
    %255 = arith.maximumf %253, %254 : vector<8x128xf32>
    %256 = arith.addf %246, %255 : vector<8x128xf32>
    %257 = math.absf %253 : vector<8x128xf32>
    %cst_150 = arith.constant 0.000000e+00 : f32
    %258 = vector.broadcast %cst_150 : f32 to vector<8x128xf32>
    %259 = arith.subf %258, %257 : vector<8x128xf32>
    %260 = math.exp %259 : vector<8x128xf32>
    %cst_151 = arith.constant 1.000000e+00 : f32
    %261 = vector.broadcast %cst_151 : f32 to vector<8x128xf32>
    %262 = arith.addf %261, %260 : vector<8x128xf32>
    %263 = math.log %262 : vector<8x128xf32>
    %264 = arith.addf %256, %263 : vector<8x128xf32>
    %cst_152 = arith.constant 5.000000e+00 : f32
    %265 = vector.broadcast %cst_152 : f32 to vector<8x128xf32>
    %266 = arith.cmpf oeq, %67, %265 : vector<8x128xf32>
    %cst_153 = arith.constant 0.000000e+00 : f32
    %267 = vector.broadcast %cst_153 : f32 to vector<8x128xf32>
    %268 = arith.select %266, %253, %267 : vector<8x128xi1>, vector<8x128xf32>
    %269 = arith.addf %251, %268 : vector<8x128xf32>
    %c0_154 = arith.constant 0 : index
    %c0_155 = arith.constant 0 : index
    %c11 = arith.constant 11 : index
    %c0_156 = arith.constant 0 : index
    %c0_157 = arith.constant 0 : index
    %270 = vector.load %arg6[%c0_154, %c0_155, %c11, %c0_156, %c0_157] : memref<1x1x25x8x128xf32, #tpu.memory_space<vmem>>, vector<1x1x1x8x128xf32>
    %271 = vector.shape_cast %270 : vector<1x1x1x8x128xf32> to vector<8x128xf32>
    %cst_158 = arith.constant 0.000000e+00 : f32
    %272 = vector.broadcast %cst_158 : f32 to vector<8x128xf32>
    %273 = arith.maximumf %271, %272 : vector<8x128xf32>
    %274 = arith.addf %264, %273 : vector<8x128xf32>
    %275 = math.absf %271 : vector<8x128xf32>
    %cst_159 = arith.constant 0.000000e+00 : f32
    %276 = vector.broadcast %cst_159 : f32 to vector<8x128xf32>
    %277 = arith.subf %276, %275 : vector<8x128xf32>
    %278 = math.exp %277 : vector<8x128xf32>
    %cst_160 = arith.constant 1.000000e+00 : f32
    %279 = vector.broadcast %cst_160 : f32 to vector<8x128xf32>
    %280 = arith.addf %279, %278 : vector<8x128xf32>
    %281 = math.log %280 : vector<8x128xf32>
    %282 = arith.addf %274, %281 : vector<8x128xf32>
    %cst_161 = arith.constant 6.000000e+00 : f32
    %283 = vector.broadcast %cst_161 : f32 to vector<8x128xf32>
    %284 = arith.cmpf oeq, %67, %283 : vector<8x128xf32>
    %cst_162 = arith.constant 0.000000e+00 : f32
    %285 = vector.broadcast %cst_162 : f32 to vector<8x128xf32>
    %286 = arith.select %284, %271, %285 : vector<8x128xi1>, vector<8x128xf32>
    %287 = arith.addf %269, %286 : vector<8x128xf32>
    %c0_163 = arith.constant 0 : index
    %c0_164 = arith.constant 0 : index
    %c12 = arith.constant 12 : index
    %c0_165 = arith.constant 0 : index
    %c0_166 = arith.constant 0 : index
    %288 = vector.load %arg6[%c0_163, %c0_164, %c12, %c0_165, %c0_166] : memref<1x1x25x8x128xf32, #tpu.memory_space<vmem>>, vector<1x1x1x8x128xf32>
    %289 = vector.shape_cast %288 : vector<1x1x1x8x128xf32> to vector<8x128xf32>
    %cst_167 = arith.constant 0.000000e+00 : f32
    %290 = vector.broadcast %cst_167 : f32 to vector<8x128xf32>
    %291 = arith.maximumf %289, %290 : vector<8x128xf32>
    %292 = arith.addf %282, %291 : vector<8x128xf32>
    %293 = math.absf %289 : vector<8x128xf32>
    %cst_168 = arith.constant 0.000000e+00 : f32
    %294 = vector.broadcast %cst_168 : f32 to vector<8x128xf32>
    %295 = arith.subf %294, %293 : vector<8x128xf32>
    %296 = math.exp %295 : vector<8x128xf32>
    %cst_169 = arith.constant 1.000000e+00 : f32
    %297 = vector.broadcast %cst_169 : f32 to vector<8x128xf32>
    %298 = arith.addf %297, %296 : vector<8x128xf32>
    %299 = math.log %298 : vector<8x128xf32>
    %300 = arith.addf %292, %299 : vector<8x128xf32>
    %cst_170 = arith.constant 7.000000e+00 : f32
    %301 = vector.broadcast %cst_170 : f32 to vector<8x128xf32>
    %302 = arith.cmpf oeq, %67, %301 : vector<8x128xf32>
    %cst_171 = arith.constant 0.000000e+00 : f32
    %303 = vector.broadcast %cst_171 : f32 to vector<8x128xf32>
    %304 = arith.select %302, %289, %303 : vector<8x128xi1>, vector<8x128xf32>
    %305 = arith.addf %287, %304 : vector<8x128xf32>
    %c0_172 = arith.constant 0 : index
    %c0_173 = arith.constant 0 : index
    %c13 = arith.constant 13 : index
    %c0_174 = arith.constant 0 : index
    %c0_175 = arith.constant 0 : index
    %306 = vector.load %arg6[%c0_172, %c0_173, %c13, %c0_174, %c0_175] : memref<1x1x25x8x128xf32, #tpu.memory_space<vmem>>, vector<1x1x1x8x128xf32>
    %307 = vector.shape_cast %306 : vector<1x1x1x8x128xf32> to vector<8x128xf32>
    %cst_176 = arith.constant 0.000000e+00 : f32
    %308 = vector.broadcast %cst_176 : f32 to vector<8x128xf32>
    %309 = arith.maximumf %307, %308 : vector<8x128xf32>
    %310 = arith.addf %300, %309 : vector<8x128xf32>
    %311 = math.absf %307 : vector<8x128xf32>
    %cst_177 = arith.constant 0.000000e+00 : f32
    %312 = vector.broadcast %cst_177 : f32 to vector<8x128xf32>
    %313 = arith.subf %312, %311 : vector<8x128xf32>
    %314 = math.exp %313 : vector<8x128xf32>
    %cst_178 = arith.constant 1.000000e+00 : f32
    %315 = vector.broadcast %cst_178 : f32 to vector<8x128xf32>
    %316 = arith.addf %315, %314 : vector<8x128xf32>
    %317 = math.log %316 : vector<8x128xf32>
    %318 = arith.addf %310, %317 : vector<8x128xf32>
    %cst_179 = arith.constant 8.000000e+00 : f32
    %319 = vector.broadcast %cst_179 : f32 to vector<8x128xf32>
    %320 = arith.cmpf oeq, %67, %319 : vector<8x128xf32>
    %cst_180 = arith.constant 0.000000e+00 : f32
    %321 = vector.broadcast %cst_180 : f32 to vector<8x128xf32>
    %322 = arith.select %320, %307, %321 : vector<8x128xi1>, vector<8x128xf32>
    %323 = arith.addf %305, %322 : vector<8x128xf32>
    %c0_181 = arith.constant 0 : index
    %c0_182 = arith.constant 0 : index
    %c14 = arith.constant 14 : index
    %c0_183 = arith.constant 0 : index
    %c0_184 = arith.constant 0 : index
    %324 = vector.load %arg6[%c0_181, %c0_182, %c14, %c0_183, %c0_184] : memref<1x1x25x8x128xf32, #tpu.memory_space<vmem>>, vector<1x1x1x8x128xf32>
    %325 = vector.shape_cast %324 : vector<1x1x1x8x128xf32> to vector<8x128xf32>
    %cst_185 = arith.constant 0.000000e+00 : f32
    %326 = vector.broadcast %cst_185 : f32 to vector<8x128xf32>
    %327 = arith.maximumf %325, %326 : vector<8x128xf32>
    %328 = arith.addf %318, %327 : vector<8x128xf32>
    %329 = math.absf %325 : vector<8x128xf32>
    %cst_186 = arith.constant 0.000000e+00 : f32
    %330 = vector.broadcast %cst_186 : f32 to vector<8x128xf32>
    %331 = arith.subf %330, %329 : vector<8x128xf32>
    %332 = math.exp %331 : vector<8x128xf32>
    %cst_187 = arith.constant 1.000000e+00 : f32
    %333 = vector.broadcast %cst_187 : f32 to vector<8x128xf32>
    %334 = arith.addf %333, %332 : vector<8x128xf32>
    %335 = math.log %334 : vector<8x128xf32>
    %336 = arith.addf %328, %335 : vector<8x128xf32>
    %cst_188 = arith.constant 9.000000e+00 : f32
    %337 = vector.broadcast %cst_188 : f32 to vector<8x128xf32>
    %338 = arith.cmpf oeq, %67, %337 : vector<8x128xf32>
    %cst_189 = arith.constant 0.000000e+00 : f32
    %339 = vector.broadcast %cst_189 : f32 to vector<8x128xf32>
    %340 = arith.select %338, %325, %339 : vector<8x128xi1>, vector<8x128xf32>
    %341 = arith.addf %323, %340 : vector<8x128xf32>
    %c0_190 = arith.constant 0 : index
    %c0_191 = arith.constant 0 : index
    %c15 = arith.constant 15 : index
    %c0_192 = arith.constant 0 : index
    %c0_193 = arith.constant 0 : index
    %342 = vector.load %arg6[%c0_190, %c0_191, %c15, %c0_192, %c0_193] : memref<1x1x25x8x128xf32, #tpu.memory_space<vmem>>, vector<1x1x1x8x128xf32>
    %343 = vector.shape_cast %342 : vector<1x1x1x8x128xf32> to vector<8x128xf32>
    %cst_194 = arith.constant 0.000000e+00 : f32
    %344 = vector.broadcast %cst_194 : f32 to vector<8x128xf32>
    %345 = arith.maximumf %343, %344 : vector<8x128xf32>
    %346 = arith.addf %336, %345 : vector<8x128xf32>
    %347 = math.absf %343 : vector<8x128xf32>
    %cst_195 = arith.constant 0.000000e+00 : f32
    %348 = vector.broadcast %cst_195 : f32 to vector<8x128xf32>
    %349 = arith.subf %348, %347 : vector<8x128xf32>
    %350 = math.exp %349 : vector<8x128xf32>
    %cst_196 = arith.constant 1.000000e+00 : f32
    %351 = vector.broadcast %cst_196 : f32 to vector<8x128xf32>
    %352 = arith.addf %351, %350 : vector<8x128xf32>
    %353 = math.log %352 : vector<8x128xf32>
    %354 = arith.addf %346, %353 : vector<8x128xf32>
    %cst_197 = arith.constant 1.000000e+01 : f32
    %355 = vector.broadcast %cst_197 : f32 to vector<8x128xf32>
    %356 = arith.cmpf oeq, %67, %355 : vector<8x128xf32>
    %cst_198 = arith.constant 0.000000e+00 : f32
    %357 = vector.broadcast %cst_198 : f32 to vector<8x128xf32>
    %358 = arith.select %356, %343, %357 : vector<8x128xi1>, vector<8x128xf32>
    %359 = arith.addf %341, %358 : vector<8x128xf32>
    %c0_199 = arith.constant 0 : index
    %c0_200 = arith.constant 0 : index
    %c16 = arith.constant 16 : index
    %c0_201 = arith.constant 0 : index
    %c0_202 = arith.constant 0 : index
    %360 = vector.load %arg6[%c0_199, %c0_200, %c16, %c0_201, %c0_202] : memref<1x1x25x8x128xf32, #tpu.memory_space<vmem>>, vector<1x1x1x8x128xf32>
    %361 = vector.shape_cast %360 : vector<1x1x1x8x128xf32> to vector<8x128xf32>
    %cst_203 = arith.constant 0.000000e+00 : f32
    %362 = vector.broadcast %cst_203 : f32 to vector<8x128xf32>
    %363 = arith.maximumf %361, %362 : vector<8x128xf32>
    %364 = arith.addf %354, %363 : vector<8x128xf32>
    %365 = math.absf %361 : vector<8x128xf32>
    %cst_204 = arith.constant 0.000000e+00 : f32
    %366 = vector.broadcast %cst_204 : f32 to vector<8x128xf32>
    %367 = arith.subf %366, %365 : vector<8x128xf32>
    %368 = math.exp %367 : vector<8x128xf32>
    %cst_205 = arith.constant 1.000000e+00 : f32
    %369 = vector.broadcast %cst_205 : f32 to vector<8x128xf32>
    %370 = arith.addf %369, %368 : vector<8x128xf32>
    %371 = math.log %370 : vector<8x128xf32>
    %372 = arith.addf %364, %371 : vector<8x128xf32>
    %cst_206 = arith.constant 1.100000e+01 : f32
    %373 = vector.broadcast %cst_206 : f32 to vector<8x128xf32>
    %374 = arith.cmpf oeq, %67, %373 : vector<8x128xf32>
    %cst_207 = arith.constant 0.000000e+00 : f32
    %375 = vector.broadcast %cst_207 : f32 to vector<8x128xf32>
    %376 = arith.select %374, %361, %375 : vector<8x128xi1>, vector<8x128xf32>
    %377 = arith.addf %359, %376 : vector<8x128xf32>
    %c0_208 = arith.constant 0 : index
    %c0_209 = arith.constant 0 : index
    %c17 = arith.constant 17 : index
    %c0_210 = arith.constant 0 : index
    %c0_211 = arith.constant 0 : index
    %378 = vector.load %arg6[%c0_208, %c0_209, %c17, %c0_210, %c0_211] : memref<1x1x25x8x128xf32, #tpu.memory_space<vmem>>, vector<1x1x1x8x128xf32>
    %379 = vector.shape_cast %378 : vector<1x1x1x8x128xf32> to vector<8x128xf32>
    %cst_212 = arith.constant 0.000000e+00 : f32
    %380 = vector.broadcast %cst_212 : f32 to vector<8x128xf32>
    %381 = arith.maximumf %379, %380 : vector<8x128xf32>
    %382 = arith.addf %372, %381 : vector<8x128xf32>
    %383 = math.absf %379 : vector<8x128xf32>
    %cst_213 = arith.constant 0.000000e+00 : f32
    %384 = vector.broadcast %cst_213 : f32 to vector<8x128xf32>
    %385 = arith.subf %384, %383 : vector<8x128xf32>
    %386 = math.exp %385 : vector<8x128xf32>
    %cst_214 = arith.constant 1.000000e+00 : f32
    %387 = vector.broadcast %cst_214 : f32 to vector<8x128xf32>
    %388 = arith.addf %387, %386 : vector<8x128xf32>
    %389 = math.log %388 : vector<8x128xf32>
    %390 = arith.addf %382, %389 : vector<8x128xf32>
    %cst_215 = arith.constant 1.200000e+01 : f32
    %391 = vector.broadcast %cst_215 : f32 to vector<8x128xf32>
    %392 = arith.cmpf oeq, %67, %391 : vector<8x128xf32>
    %cst_216 = arith.constant 0.000000e+00 : f32
    %393 = vector.broadcast %cst_216 : f32 to vector<8x128xf32>
    %394 = arith.select %392, %379, %393 : vector<8x128xi1>, vector<8x128xf32>
    %395 = arith.addf %377, %394 : vector<8x128xf32>
    %c0_217 = arith.constant 0 : index
    %c0_218 = arith.constant 0 : index
    %c18 = arith.constant 18 : index
    %c0_219 = arith.constant 0 : index
    %c0_220 = arith.constant 0 : index
    %396 = vector.load %arg6[%c0_217, %c0_218, %c18, %c0_219, %c0_220] : memref<1x1x25x8x128xf32, #tpu.memory_space<vmem>>, vector<1x1x1x8x128xf32>
    %397 = vector.shape_cast %396 : vector<1x1x1x8x128xf32> to vector<8x128xf32>
    %cst_221 = arith.constant 0.000000e+00 : f32
    %398 = vector.broadcast %cst_221 : f32 to vector<8x128xf32>
    %399 = arith.maximumf %397, %398 : vector<8x128xf32>
    %400 = arith.addf %390, %399 : vector<8x128xf32>
    %401 = math.absf %397 : vector<8x128xf32>
    %cst_222 = arith.constant 0.000000e+00 : f32
    %402 = vector.broadcast %cst_222 : f32 to vector<8x128xf32>
    %403 = arith.subf %402, %401 : vector<8x128xf32>
    %404 = math.exp %403 : vector<8x128xf32>
    %cst_223 = arith.constant 1.000000e+00 : f32
    %405 = vector.broadcast %cst_223 : f32 to vector<8x128xf32>
    %406 = arith.addf %405, %404 : vector<8x128xf32>
    %407 = math.log %406 : vector<8x128xf32>
    %408 = arith.addf %400, %407 : vector<8x128xf32>
    %cst_224 = arith.constant 1.300000e+01 : f32
    %409 = vector.broadcast %cst_224 : f32 to vector<8x128xf32>
    %410 = arith.cmpf oeq, %67, %409 : vector<8x128xf32>
    %cst_225 = arith.constant 0.000000e+00 : f32
    %411 = vector.broadcast %cst_225 : f32 to vector<8x128xf32>
    %412 = arith.select %410, %397, %411 : vector<8x128xi1>, vector<8x128xf32>
    %413 = arith.addf %395, %412 : vector<8x128xf32>
    %c0_226 = arith.constant 0 : index
    %c0_227 = arith.constant 0 : index
    %c19 = arith.constant 19 : index
    %c0_228 = arith.constant 0 : index
    %c0_229 = arith.constant 0 : index
    %414 = vector.load %arg6[%c0_226, %c0_227, %c19, %c0_228, %c0_229] : memref<1x1x25x8x128xf32, #tpu.memory_space<vmem>>, vector<1x1x1x8x128xf32>
    %415 = vector.shape_cast %414 : vector<1x1x1x8x128xf32> to vector<8x128xf32>
    %cst_230 = arith.constant 0.000000e+00 : f32
    %416 = vector.broadcast %cst_230 : f32 to vector<8x128xf32>
    %417 = arith.maximumf %415, %416 : vector<8x128xf32>
    %418 = arith.addf %408, %417 : vector<8x128xf32>
    %419 = math.absf %415 : vector<8x128xf32>
    %cst_231 = arith.constant 0.000000e+00 : f32
    %420 = vector.broadcast %cst_231 : f32 to vector<8x128xf32>
    %421 = arith.subf %420, %419 : vector<8x128xf32>
    %422 = math.exp %421 : vector<8x128xf32>
    %cst_232 = arith.constant 1.000000e+00 : f32
    %423 = vector.broadcast %cst_232 : f32 to vector<8x128xf32>
    %424 = arith.addf %423, %422 : vector<8x128xf32>
    %425 = math.log %424 : vector<8x128xf32>
    %426 = arith.addf %418, %425 : vector<8x128xf32>
    %cst_233 = arith.constant 1.400000e+01 : f32
    %427 = vector.broadcast %cst_233 : f32 to vector<8x128xf32>
    %428 = arith.cmpf oeq, %67, %427 : vector<8x128xf32>
    %cst_234 = arith.constant 0.000000e+00 : f32
    %429 = vector.broadcast %cst_234 : f32 to vector<8x128xf32>
    %430 = arith.select %428, %415, %429 : vector<8x128xi1>, vector<8x128xf32>
    %431 = arith.addf %413, %430 : vector<8x128xf32>
    %c0_235 = arith.constant 0 : index
    %c0_236 = arith.constant 0 : index
    %c20 = arith.constant 20 : index
    %c0_237 = arith.constant 0 : index
    %c0_238 = arith.constant 0 : index
    %432 = vector.load %arg6[%c0_235, %c0_236, %c20, %c0_237, %c0_238] : memref<1x1x25x8x128xf32, #tpu.memory_space<vmem>>, vector<1x1x1x8x128xf32>
    %433 = vector.shape_cast %432 : vector<1x1x1x8x128xf32> to vector<8x128xf32>
    %cst_239 = arith.constant 0.000000e+00 : f32
    %434 = vector.broadcast %cst_239 : f32 to vector<8x128xf32>
    %435 = arith.maximumf %433, %434 : vector<8x128xf32>
    %436 = arith.addf %426, %435 : vector<8x128xf32>
    %437 = math.absf %433 : vector<8x128xf32>
    %cst_240 = arith.constant 0.000000e+00 : f32
    %438 = vector.broadcast %cst_240 : f32 to vector<8x128xf32>
    %439 = arith.subf %438, %437 : vector<8x128xf32>
    %440 = math.exp %439 : vector<8x128xf32>
    %cst_241 = arith.constant 1.000000e+00 : f32
    %441 = vector.broadcast %cst_241 : f32 to vector<8x128xf32>
    %442 = arith.addf %441, %440 : vector<8x128xf32>
    %443 = math.log %442 : vector<8x128xf32>
    %444 = arith.addf %436, %443 : vector<8x128xf32>
    %cst_242 = arith.constant 1.500000e+01 : f32
    %445 = vector.broadcast %cst_242 : f32 to vector<8x128xf32>
    %446 = arith.cmpf oeq, %67, %445 : vector<8x128xf32>
    %cst_243 = arith.constant 0.000000e+00 : f32
    %447 = vector.broadcast %cst_243 : f32 to vector<8x128xf32>
    %448 = arith.select %446, %433, %447 : vector<8x128xi1>, vector<8x128xf32>
    %449 = arith.addf %431, %448 : vector<8x128xf32>
    %c0_244 = arith.constant 0 : index
    %c0_245 = arith.constant 0 : index
    %c21 = arith.constant 21 : index
    %c0_246 = arith.constant 0 : index
    %c0_247 = arith.constant 0 : index
    %450 = vector.load %arg6[%c0_244, %c0_245, %c21, %c0_246, %c0_247] : memref<1x1x25x8x128xf32, #tpu.memory_space<vmem>>, vector<1x1x1x8x128xf32>
    %451 = vector.shape_cast %450 : vector<1x1x1x8x128xf32> to vector<8x128xf32>
    %cst_248 = arith.constant 0.000000e+00 : f32
    %452 = vector.broadcast %cst_248 : f32 to vector<8x128xf32>
    %453 = arith.maximumf %451, %452 : vector<8x128xf32>
    %454 = arith.addf %444, %453 : vector<8x128xf32>
    %455 = math.absf %451 : vector<8x128xf32>
    %cst_249 = arith.constant 0.000000e+00 : f32
    %456 = vector.broadcast %cst_249 : f32 to vector<8x128xf32>
    %457 = arith.subf %456, %455 : vector<8x128xf32>
    %458 = math.exp %457 : vector<8x128xf32>
    %cst_250 = arith.constant 1.000000e+00 : f32
    %459 = vector.broadcast %cst_250 : f32 to vector<8x128xf32>
    %460 = arith.addf %459, %458 : vector<8x128xf32>
    %461 = math.log %460 : vector<8x128xf32>
    %462 = arith.addf %454, %461 : vector<8x128xf32>
    %cst_251 = arith.constant 1.600000e+01 : f32
    %463 = vector.broadcast %cst_251 : f32 to vector<8x128xf32>
    %464 = arith.cmpf oeq, %67, %463 : vector<8x128xf32>
    %cst_252 = arith.constant 0.000000e+00 : f32
    %465 = vector.broadcast %cst_252 : f32 to vector<8x128xf32>
    %466 = arith.select %464, %451, %465 : vector<8x128xi1>, vector<8x128xf32>
    %467 = arith.addf %449, %466 : vector<8x128xf32>
    %c0_253 = arith.constant 0 : index
    %c0_254 = arith.constant 0 : index
    %c22 = arith.constant 22 : index
    %c0_255 = arith.constant 0 : index
    %c0_256 = arith.constant 0 : index
    %468 = vector.load %arg6[%c0_253, %c0_254, %c22, %c0_255, %c0_256] : memref<1x1x25x8x128xf32, #tpu.memory_space<vmem>>, vector<1x1x1x8x128xf32>
    %469 = vector.shape_cast %468 : vector<1x1x1x8x128xf32> to vector<8x128xf32>
    %cst_257 = arith.constant 0.000000e+00 : f32
    %470 = vector.broadcast %cst_257 : f32 to vector<8x128xf32>
    %471 = arith.maximumf %469, %470 : vector<8x128xf32>
    %472 = arith.addf %462, %471 : vector<8x128xf32>
    %473 = math.absf %469 : vector<8x128xf32>
    %cst_258 = arith.constant 0.000000e+00 : f32
    %474 = vector.broadcast %cst_258 : f32 to vector<8x128xf32>
    %475 = arith.subf %474, %473 : vector<8x128xf32>
    %476 = math.exp %475 : vector<8x128xf32>
    %cst_259 = arith.constant 1.000000e+00 : f32
    %477 = vector.broadcast %cst_259 : f32 to vector<8x128xf32>
    %478 = arith.addf %477, %476 : vector<8x128xf32>
    %479 = math.log %478 : vector<8x128xf32>
    %480 = arith.addf %472, %479 : vector<8x128xf32>
    %cst_260 = arith.constant 1.700000e+01 : f32
    %481 = vector.broadcast %cst_260 : f32 to vector<8x128xf32>
    %482 = arith.cmpf oeq, %67, %481 : vector<8x128xf32>
    %cst_261 = arith.constant 0.000000e+00 : f32
    %483 = vector.broadcast %cst_261 : f32 to vector<8x128xf32>
    %484 = arith.select %482, %469, %483 : vector<8x128xi1>, vector<8x128xf32>
    %485 = arith.addf %467, %484 : vector<8x128xf32>
    %c0_262 = arith.constant 0 : index
    %c0_263 = arith.constant 0 : index
    %c23 = arith.constant 23 : index
    %c0_264 = arith.constant 0 : index
    %c0_265 = arith.constant 0 : index
    %486 = vector.load %arg6[%c0_262, %c0_263, %c23, %c0_264, %c0_265] : memref<1x1x25x8x128xf32, #tpu.memory_space<vmem>>, vector<1x1x1x8x128xf32>
    %487 = vector.shape_cast %486 : vector<1x1x1x8x128xf32> to vector<8x128xf32>
    %cst_266 = arith.constant 0.000000e+00 : f32
    %488 = vector.broadcast %cst_266 : f32 to vector<8x128xf32>
    %489 = arith.maximumf %487, %488 : vector<8x128xf32>
    %490 = arith.addf %480, %489 : vector<8x128xf32>
    %491 = math.absf %487 : vector<8x128xf32>
    %cst_267 = arith.constant 0.000000e+00 : f32
    %492 = vector.broadcast %cst_267 : f32 to vector<8x128xf32>
    %493 = arith.subf %492, %491 : vector<8x128xf32>
    %494 = math.exp %493 : vector<8x128xf32>
    %cst_268 = arith.constant 1.000000e+00 : f32
    %495 = vector.broadcast %cst_268 : f32 to vector<8x128xf32>
    %496 = arith.addf %495, %494 : vector<8x128xf32>
    %497 = math.log %496 : vector<8x128xf32>
    %498 = arith.addf %490, %497 : vector<8x128xf32>
    %cst_269 = arith.constant 1.800000e+01 : f32
    %499 = vector.broadcast %cst_269 : f32 to vector<8x128xf32>
    %500 = arith.cmpf oeq, %67, %499 : vector<8x128xf32>
    %cst_270 = arith.constant 0.000000e+00 : f32
    %501 = vector.broadcast %cst_270 : f32 to vector<8x128xf32>
    %502 = arith.select %500, %487, %501 : vector<8x128xi1>, vector<8x128xf32>
    %503 = arith.addf %485, %502 : vector<8x128xf32>
    %c0_271 = arith.constant 0 : index
    %c0_272 = arith.constant 0 : index
    %c24 = arith.constant 24 : index
    %c0_273 = arith.constant 0 : index
    %c0_274 = arith.constant 0 : index
    %504 = vector.load %arg6[%c0_271, %c0_272, %c24, %c0_273, %c0_274] : memref<1x1x25x8x128xf32, #tpu.memory_space<vmem>>, vector<1x1x1x8x128xf32>
    %505 = vector.shape_cast %504 : vector<1x1x1x8x128xf32> to vector<8x128xf32>
    %cst_275 = arith.constant 0.000000e+00 : f32
    %506 = vector.broadcast %cst_275 : f32 to vector<8x128xf32>
    %507 = arith.maximumf %505, %506 : vector<8x128xf32>
    %508 = arith.addf %498, %507 : vector<8x128xf32>
    %509 = math.absf %505 : vector<8x128xf32>
    %cst_276 = arith.constant 0.000000e+00 : f32
    %510 = vector.broadcast %cst_276 : f32 to vector<8x128xf32>
    %511 = arith.subf %510, %509 : vector<8x128xf32>
    %512 = math.exp %511 : vector<8x128xf32>
    %cst_277 = arith.constant 1.000000e+00 : f32
    %513 = vector.broadcast %cst_277 : f32 to vector<8x128xf32>
    %514 = arith.addf %513, %512 : vector<8x128xf32>
    %515 = math.log %514 : vector<8x128xf32>
    %516 = arith.addf %508, %515 : vector<8x128xf32>
    %cst_278 = arith.constant 1.900000e+01 : f32
    %517 = vector.broadcast %cst_278 : f32 to vector<8x128xf32>
    %518 = arith.cmpf oeq, %67, %517 : vector<8x128xf32>
    %cst_279 = arith.constant 0.000000e+00 : f32
    %519 = vector.broadcast %cst_279 : f32 to vector<8x128xf32>
    %520 = arith.select %518, %505, %519 : vector<8x128xi1>, vector<8x128xf32>
    %521 = arith.addf %503, %520 : vector<8x128xf32>
    %522 = arith.subf %516, %521 : vector<8x128xf32>
    %cst_280 = arith.constant 0.000000e+00 : f32
    %523 = vector.broadcast %cst_280 : f32 to vector<8x128xf32>
    %524 = arith.select %145, %522, %523 : vector<8x128xi1>, vector<8x128xf32>
    %cst_281 = arith.constant dense<0.000000e+00> : vector<8xf32>
    %525 = vector.multi_reduction <add>, %524, %cst_281 [1] : vector<8x128xf32> to vector<8xf32>
    %526 = vector.shape_cast %525 : vector<8xf32> to vector<8x1xf32>
    %cst_282 = arith.constant dense<0.000000e+00> : vector<1xf32>
    %527 = vector.multi_reduction <add>, %526, %cst_282 [0] : vector<8x1xf32> to vector<1xf32>
    %528 = vector.shape_cast %527 : vector<1xf32> to vector<1x1xf32>
    %cst_283 = arith.constant 0.000000e+00 : f32
    %529 = vector.broadcast %cst_283 : f32 to vector<8x128xf32>
    %530 = arith.maximumf %40, %529 : vector<8x128xf32>
    %531 = arith.mulf %40, %147 : vector<8x128xf32>
    %532 = arith.subf %530, %531 : vector<8x128xf32>
    %533 = math.absf %40 : vector<8x128xf32>
    %cst_284 = arith.constant 0.000000e+00 : f32
    %534 = vector.broadcast %cst_284 : f32 to vector<8x128xf32>
    %535 = arith.subf %534, %533 : vector<8x128xf32>
    %536 = math.exp %535 : vector<8x128xf32>
    %cst_285 = arith.constant 1.000000e+00 : f32
    %537 = vector.broadcast %cst_285 : f32 to vector<8x128xf32>
    %538 = arith.addf %537, %536 : vector<8x128xf32>
    %539 = math.log %538 : vector<8x128xf32>
    %540 = arith.addf %532, %539 : vector<8x128xf32>
    %cst_286 = arith.constant 0.000000e+00 : f32
    %541 = vector.broadcast %cst_286 : f32 to vector<8x128xf32>
    %542 = arith.cmpf ogt, %82, %541 : vector<8x128xf32>
    %543 = arith.ori %542, %145 : vector<8x128xi1>
    %cst_287 = arith.constant 0.000000e+00 : f32
    %544 = vector.broadcast %cst_287 : f32 to vector<8x128xf32>
    %545 = arith.select %543, %540, %544 : vector<8x128xi1>, vector<8x128xf32>
    %cst_288 = arith.constant dense<0.000000e+00> : vector<8xf32>
    %546 = vector.multi_reduction <add>, %545, %cst_288 [1] : vector<8x128xf32> to vector<8xf32>
    %547 = vector.shape_cast %546 : vector<8xf32> to vector<8x1xf32>
    %cst_289 = arith.constant dense<0.000000e+00> : vector<1xf32>
    %548 = vector.multi_reduction <add>, %547, %cst_289 [0] : vector<8x1xf32> to vector<1xf32>
    %549 = vector.shape_cast %548 : vector<1xf32> to vector<1x1xf32>
    %550 = arith.extui %543 : vector<8x128xi1> to vector<8x128xi32>
    %551 = arith.sitofp %550 : vector<8x128xi32> to vector<8x128xf32>
    %cst_290 = arith.constant dense<0.000000e+00> : vector<8xf32>
    %552 = vector.multi_reduction <add>, %551, %cst_290 [1] : vector<8x128xf32> to vector<8xf32>
    %553 = vector.shape_cast %552 : vector<8xf32> to vector<8x1xf32>
    %cst_291 = arith.constant dense<0.000000e+00> : vector<1xf32>
    %554 = vector.multi_reduction <add>, %553, %cst_291 [0] : vector<8x1xf32> to vector<1xf32>
    %555 = vector.shape_cast %554 : vector<1xf32> to vector<1x1xf32>
    %cst_292 = arith.constant 0.000000e+00 : f32
    %556 = vector.broadcast %cst_292 : f32 to vector<3x1xf32>
    %557 = tpu.concatenate %155, %159, %528, %549, %555, %556 in 0 : vector<1x1xf32>, vector<1x1xf32>, vector<1x1xf32>, vector<1x1xf32>, vector<1x1xf32>, vector<3x1xf32> -> vector<8x1xf32>
    %558 = vector.shape_cast %557 : vector<8x1xf32> to vector<8x1xf32>
    %559 = vector.broadcast %558 : vector<8x1xf32> to vector<8x128xf32>
    %c0_293 = arith.constant 0 : index
    %c0_294 = arith.constant 0 : index
    %c0_295 = arith.constant 0 : index
    %c0_296 = arith.constant 0 : index
    %c0_297 = arith.constant 0 : index
    %560 = vector.load %arg9[%c0_293, %c0_294, %c0_295, %c0_296, %c0_297] : memref<1x1x1x8x128xf32, #tpu.memory_space<vmem>>, vector<1x1x1x8x128xf32>
    %561 = vector.shape_cast %560 : vector<1x1x1x8x128xf32> to vector<8x128xf32>
    %562 = vector.shape_cast %559 : vector<8x128xf32> to vector<1x1x1x8x128xf32>
    tpu.vector_store %arg9[%c0_293, %c0_294, %c0_295, %c0_296, %c0_297], %562 {strides = array<i32>} : memref<1x1x1x8x128xf32, #tpu.memory_space<vmem>>, vector<1x1x1x8x128xf32>,
    return
  }
  func.func @transform_0(%arg0: i32, %arg1: i32, %arg2: i32, %arg3: memref<64xf32, #tpu.memory_space<smem>>, %arg4: memref<6xf32, #tpu.memory_space<smem>>, %arg5: memref<2xi32, #tpu.memory_space<smem>>) -> (i32, i32, i32, i32, i32) {
    %c0_i32 = arith.constant 0 : i32
    %c0_i32_0 = arith.constant 0 : i32
    %c0_i32_1 = arith.constant 0 : i32
    return %arg0, %arg1, %c0_i32, %arg2, %c0_i32_0 : i32, i32, i32, i32, i32
  }
  func.func @transform_1(%arg0: i32, %arg1: i32, %arg2: i32, %arg3: memref<64xf32, #tpu.memory_space<smem>>, %arg4: memref<6xf32, #tpu.memory_space<smem>>, %arg5: memref<2xi32, #tpu.memory_space<smem>>) -> (i32, i32, i32, i32, i32) {
    %c0_i32 = arith.constant 0 : i32
    %c0_i32_0 = arith.constant 0 : i32
    %c0_i32_1 = arith.constant 0 : i32
    return %arg0, %arg1, %c0_i32, %arg2, %c0_i32_0 : i32, i32, i32, i32, i32
  }
  func.func @transform_2(%arg0: i32, %arg1: i32, %arg2: i32, %arg3: memref<64xf32, #tpu.memory_space<smem>>, %arg4: memref<6xf32, #tpu.memory_space<smem>>, %arg5: memref<2xi32, #tpu.memory_space<smem>>) -> (i32, i32, i32) {
    %c0_i32 = arith.constant 0 : i32
    %c0_i32_0 = arith.constant 0 : i32
    %c0_i32_1 = arith.constant 0 : i32
    return %c0_i32, %arg2, %c0_i32_0 : i32, i32, i32
  }
  func.func @transform_3(%arg0: i32, %arg1: i32, %arg2: i32, %arg3: memref<64xf32, #tpu.memory_space<smem>>, %arg4: memref<6xf32, #tpu.memory_space<smem>>, %arg5: memref<2xi32, #tpu.memory_space<smem>>) -> (i32, i32, i32, i32, i32) {
    %c0_i32 = arith.constant 0 : i32
    %c0_i32_0 = arith.constant 0 : i32
    %c0_i32_1 = arith.constant 0 : i32
    return %arg0, %arg1, %arg2, %c0_i32, %c0_i32_0 : i32, i32, i32, i32, i32
  }
}

</mosaic_0001>

<bundles_post_ra>
// kernel: _lambda_.1
= control target key start
LH: loop header
LB: loop body
LE: loop exit
PB: predicated region body
PF: predicated region fallthrough
CT: control target
= control target key end

     0   :  { %s1738_s0 = inlined_call_operand.vmem [shape: f32[64], index: 0, kind: input, shape index: {}]   ;;  %s1739_s3 = inlined_call_operand.vmem [shape: f32[2,3,25,8,128], index: 3, kind: input, shape index: {}]   ;;  %s1740_s4 = inlined_call_operand.vmem [shape: f32[2,3,8,8,128], index: 4, kind: input, shape index: {}]   ;;  %s1741_s5 = inlined_call_operand.vmem [shape: f32[2,8,128], index: 5, kind: input, shape index: {}]   ;;  %s1742_s6 = inlined_call_operand.vmem [shape: f32[2,3,1,8,128], index: 6, kind: output, shape index: {}]   ;;  %s1743_s1 = inlined_call_operand.vmem [shape: f32[6], index: 1, kind: input, shape index: {}]   ;;  %s1744_s2 = inlined_call_operand.vmem [shape: s32[2], index: 2, kind: input, shape index: {}]  }
   0x1   :  { %s11_s23 = sshll.u32 %s1738_s0, 4  ;;  %s15_s26 = sshll.u32 %s1743_s1, 4  ;;  %s12_s23 = int_to_ptr.vmem [resolvable:$true] %s11_s23  ;;  %s16_s26 = int_to_ptr.vmem [resolvable:$true] %s15_s26 }
   0x2   :  { %s1231_s27 = scalar_lea.vmem %s12_s23, 16  ;;  %p1236_p1 = scmp.lt.s32.totalorder %s12_s23, %s12_s23 }
   0x3   :  { %p1232_p0 = scmp.ne.s32.totalorder %s12_s23, %s1231_s27  ;;  %p1237_p2 = scmp.lt.s32.totalorder %s1231_s27, %s1231_s27 }
   0x5   :  { %p1238_p3 = por %p1237_p2, %p1236_p1 }
   0x7   :  { %p1239_p4 = pnand %p1238_p3, %p1232_p0 }
   0x9   :  { %1242 = shalt.err (!%p1239_p4)  }
   0xa   :  { %s1333_s28 = smov [#allocation3]   ;;  %s1243_s29 = scalar_lea.vmem %s16_s26, 16 }
   0xb   :  { %14 = dma.vmem_to_smem %s12_s23, 16, %s1333_s28, [#allocation2] }
   0xc   :  { %p1244_p5 = scmp.ne.s32.totalorder %s16_s26, %s1243_s29  ;;  %p1248_p6 = scmp.lt.s32.totalorder %s16_s26, %s16_s26 }
   0xd   :  { %p1249_p7 = scmp.lt.s32.totalorder %s1243_s29, %s1243_s29 }
   0xf   :  { %p1250_p8 = por %p1249_p7, %p1248_p6 }
  0x11   :  { %p1251_p9 = pnand %p1250_p8, %p1244_p5 }
  0x13   :  { %1254 = shalt.err (!%p1251_p9)  }
  0x14   :  { %s1334_s0 = smov [#allocation4]   ;;  %s19_s7 = sshll.u32 %s1744_s2, 4  ;;  %s20_s7 = int_to_ptr.vmem [resolvable:$true] %s19_s7 }
  0x15   :  { %18 = dma.vmem_to_smem %s16_s26, 16, %s1334_s0, [#allocation2] }
  0x16   :  { %s1255_s8 = scalar_lea.vmem %s20_s7, 16  ;;  %p1260_p11 = scmp.lt.s32.totalorder %s20_s7, %s20_s7 }
  0x17   :  { %p1256_p10 = scmp.ne.s32.totalorder %s20_s7, %s1255_s8  ;;  %p1261_p12 = scmp.lt.s32.totalorder %s1255_s8, %s1255_s8 }
  0x19   :  { %p1262_p13 = por %p1261_p12, %p1260_p11 }
  0x1b   :  { %p1263_p0 = pnand %p1262_p13, %p1256_p10 }
  0x1d   :  { %1266 = shalt.err (!%p1263_p0)  }
  0x1e   :  { %s1335_s9 = smov [#allocation5]  }
  0x1f   :  { %22 = dma.vmem_to_smem %s20_s7, 16, %s1335_s9, [#allocation2] }
  0x20   :  { %1299 = dma.done.wait [#allocation2], 48 }
  0x21   :  { %1300 = vsyncadd [#allocation2], 4294967248 }
  0x22   :  { %24 = sfence }
  0x23   :  { %s1382_s10 = smov 0   ;;  %s1384_s11 = smov 0  }
  0x24   :  { %s1386_s12 = smov 0   ;;  %s1388_s2 = smov 0  }
  0x25   :  { %s1390_s13 = smov 0  }
  0x26 LB: > { %s45_s14 = sadd.s32 1, %s1311_s12  ;;  %s49_s15 = sadd.s32 1, %s1315_s2  ;;  %s1319_s13 = sphi %s1390_s13, %s30_s13   ;;  %s1315_s2 = sphi %s1388_s2, %s1752_s2   ;;  %s1311_s12 = sphi %s1386_s12, %s1751_s12   ;;  %s1307_s11 = sphi %s1384_s11, %s1750_s11   ;;  %s1303_s10 = sphi %s1382_s10, %s1749_s10  }
  0x27   : > { %p47_p1 = scmp.ge.s32.totalorder %s45_s14, 3  ;;  %p1006_p2 = scmp.ge.s32.totalorder %s1319_s13, 1 }
  0x28   : > { %p218_p3 = scmp.lt.s32.totalorder %s1319_s13, 7 }
  0x29   : > { %s1754_s14 = smov (%p47_p1, %s45_s14), 0  ;;  %s1756_s15 = smov (!%p47_p1, %s49_s15), %s1315_s2 }
  0x2a   : > { %p219_p4 = pnand %p1006_p2, %p218_p3  ;;  %p51_p5 = scmp.ge.s32.totalorder %s1756_s15, 2 }
  0x2b   : > { %p271_p6 = scmp.lt.s32.totalorder (!%p219_p4), %s1307_s11, 1  ;;  %p273_p7 = scmp.lt.s32.totalorder (!%p219_p4), %s1303_s10, 2  ;;  %v310_v30 = vld [vmem:[%s1741_s5] sm:$0xff] (!%p219_p4)  ;;  %v1011_v31 = vld [vmem:[%s1741_s5 + $0x8] sm:$0xff] (!%p219_p4)  ;;  %v1329_v42 = vmov (!%p219_p4), 0.0  }
  0x2c   : > { %s1758_s15 = smov (%p51_p5, %s1756_s15), 0  ;;  %222 = sbr.rel (%p219_p4) target bundleno = 549 (0x225), region = 32 }
  0x2d   : > { %s1419_s16 = sld [smem:[#allocation5 + %s1307_s11]] (!%p219_p4) }
  0x33   : > { %s272_s17 = scalar_select %p271_p6, %s1307_s11, 1 }
  0x34   : > { %s274_s18 = scalar_select %p273_p7, %s1303_s10, 2 }
  0x35   : > { %s1053_s19 = smul.u32 75, %s272_s17  ;;  %p1024_p8 = scmp.le.s32.totalorder %s1419_s16, 0 }
  0x36   : > { %s1052_s20 = smul.u32 25, %s274_s18  ;;  %s1008_s21 = sshll.u32 %s274_s18, 3  ;;  %v1321_v43 = vmov (!%p1024_p8), 0.0  }
  0x37   : > { %s1054_s22 = smul.u32 24, %s272_s17  ;;  %s1485_s27 = smov (!%p1024_p8), 0  }
  0x38   : > { %s280_s23 = sadd.s32 %s1053_s19, %s1052_s20  ;;  %s1055_s24 = smul.u32 3, %s272_s17 }
  0x39   : > { %s1007_s25 = sshll.u32 %s280_s23, 3  ;;  %s292_s26 = sadd.s32 %s1054_s22, %s1008_s21 }
  0x3a   : > { %s1426_s29 = scalar_lea.vmem %s1739_s3, %s1007_s25  ;;  %s1009_s0 = sshll.u32 %s292_s26, 3 }
  0x3b   : > { %s294_s7 = scalar_lea.vmem %s1740_s4, %s1009_s0  ;;  %s307_s8 = sadd.s32 %s1055_s24, %s274_s18  ;;  %v317_v0 = vld [vmem:[%s1426_s29] sm:$0xff]  ;;  %v1013_v1 = vld [vmem:[%s1426_s29 + $0x8] sm:$0xff]  ;;  %v1014_v2 = vld [vmem:[%s1426_s29 + $0x10] sm:$0xff] }
  0x3c   : > { %s1010_s9 = sshll.u32 %s307_s8, 3  ;;  %s1012_s17 = sshll.u32 %s1303_s10, 1  ;;  %v318_v3 = vsub.f32 0.0, %v317_v0  ;;  %v326_v4 = vsub.f32 0.0, %v1013_v1  ;;  %v334_v5 = vmul.f32 1.442695, %v1014_v2 }
  0x3d   : > { %s1438_s21 = scalar_lea.vmem %s1742_s6, %s1010_s9  ;;  %v1015_v6 = vld [vmem:[%s1426_s29 + $0x18] sm:$0xff]  ;;  %v1442_v7 = vld [vmem:[%s1426_s29 + $0x20] sm:$0xff]  ;;  %s315_s18 = sadd.s32 1, %s1012_s17  ;;  %v1446_v12 = vld [vmem:[%s294_s7 + $0x8] sm:$0xff] }
  0x3e   : > { %v1444_v8 = vld [vmem:[%s294_s7] sm:$0xff]  ;;  %v319_v9 = vmul.f32 1.442695, %v318_v3  ;;  %v327_v10 = vmul.f32 1.442695, %v326_v4  ;;  %1125 = vpow2.f32 %v334_v5  ;;  %v1448_v13 = vld [vmem:[%s294_s7 + $0x10] sm:$0xff] }
  0x3f   : > { %v340_v11 = vmul.f32 1.442695, %v1015_v6  ;;  %v1450_v14 = vld [vmem:[%s294_s7 + $0x18] sm:$0xff]  ;;  %v1452_v15 = vld [vmem:[%s294_s7 + $0x20] sm:$0xff]  ;;  %v1454_v16 = vld [vmem:[%s294_s7 + $0x28] sm:$0xff]  ;;  %s314_s10 = sld [smem:[#allocation4 + %s1012_s17]] }
  0x40   : > { %1127 = vpow2.f32 %v319_v9  ;;  %v1456_v17 = vld [vmem:[%s294_s7 + $0x30] sm:$0xff]  ;;  %v1458_v18 = vld [vmem:[%s294_s7 + $0x38] sm:$0xff]  ;;  %s316_s22 = sld [smem:[#allocation4 + %s315_s18]] }
  0x41   : > { %1129 = vpow2.f32 %v327_v10 }
  0x42   : > { %1131 = vpow2.f32 %v340_v11 }
  0x45   : > { %v336_v21 = vstv %s314_s10 }
  0x46   : > { %v342_v22 = vstv %s316_s22 }
  0x48   : > { %v1126_v19 = vpop.eup %1125 }
  0x49   : > { %v337_v27 = vmul.f32 %v1126_v19, %v336_v21 }
  0x4a   : > { %v1128_v20 = vpop.eup %1127 }
  0x4b   : > { %v1130_v23 = vpop.eup %1129  ;;  %v321_v24 = vadd.f32 1.0, %v1128_v20  ;;  %v348_v32 = vmul.f32 0.5, %v337_v27 }
  0x4c   : > { %v1132_v25 = vpop.eup %1131  ;;  %v329_v26 = vadd.f32 1.0, %v1130_v23 }
  0x4d   : > { %1133 = vrcp.f32 %v321_v24  ;;  %v343_v28 = vmul.f32 %v1132_v25, %v342_v22 }
  0x4e   : > { %1135 = vrcp.f32 %v329_v26 }
  0x4f   : > { %v1460_v29 = vmul.f32 %v343_v28, %v337_v27  ;;  %v351_v34 = vmul.f32 0.5, %v343_v28 }
  0x55   : > { %946 = sbr.rel (%p1024_p8) target bundleno = 139 (0x8b), region = 101 }
  0x57   : > { %v1134_v33 = vpop.eup %1133 }
  0x58   : > { %v1136_v35 = vpop.eup %1135  ;;  %v1468_v36 = vadd.f32 %v1134_v33, %v310_v30 }
  0x59   : > { %v1470_v37 = vadd.f32 %v1136_v35, %v1011_v31 }
  0x5a   : > { %v1473_v38 = vsub.f32 %v1468_v36, %v348_v32  ;;  %v1476_v39 = vadd.f32 %v348_v32, %v1468_v36 }
  0x5b   : > { %v1479_v40 = vsub.f32 %v1470_v37, %v351_v34  ;;  %v1482_v41 = vadd.f32 %v351_v34, %v1470_v37 }
  0x5c LB: >> { %s1025_s28 = sshll.u32 %s1307_s11, 3  ;;  %s1327_s27 = sphi %s1485_s27, %s374_s27   ;;  %v1323_v43 = vphi %v1321_v43, %v1322_v43  }
  0x5d   : >> { %s379_s0 = sadd.s32 %s1327_s27, %s1025_s28  ;;  %s374_s27 = sadd.s32 1, %s1327_s27  }
  0x5e   : >> { %s1026_s1 = sshll.u32 %s379_s0, 2  ;;  %p373_p9 = scmp.ge.s32.totalorder %s374_s27, %s1419_s16 }
  0x5f   : >> { %s381_s30 = sld [smem:[#allocation3 + %s1026_s1]]  ;;  %s382_s7 = sadd.s32 1, %s1026_s1 }
  0x60   : >> { %s384_s8 = sadd.s32 2, %s1026_s1  ;;  %s386_s17 = sadd.s32 3, %s1026_s1 }
  0x61   : >> { %s385_s9 = sld [smem:[#allocation3 + %s384_s8]] }
  0x62   : >> { %s387_s19 = sld [smem:[#allocation3 + %s386_s17]] }
  0x63   : >> { %s383_s20 = sld [smem:[#allocation3 + %s382_s7]] }
  0x67   : >> { %s388_s18 = smul.f32 0.5, %s385_s9 }
  0x68   : >> { %s391_s10 = smul.f32 0.5, %s387_s19 }
  0x69   : >> { %s389_s22 = ssub.f32 %s381_s30, %s388_s18  ;;  %s407_s26 = smul.f32 %s387_s19, %s385_s9 }
  0x6a   : >> { %s390_s23 = sadd.f32 %s388_s18, %s381_s30 }
  0x6b   : >> { %s392_s24 = ssub.f32 %s383_s20, %s391_s10  ;;  %v396_v44 = vstv %s389_s22  ;;  %v408_v53 = vstv %s407_s26 }
  0x6c   : >> { %s393_s25 = sadd.f32 %s391_s10, %s383_s20  ;;  %v394_v45 = vstv %s390_s23  ;;  %v397_v46 = vmax.f32 %v396_v44, %v1473_v38  ;;  %v409_v57 = vadd.f32 %v408_v53, %v1460_v29 }
  0x6d   : >> { %v395_v47 = vmin.f32 %v394_v45, %v1476_v39  ;;  %v402_v48 = vstv %s392_s24 }
  0x6e   : >> { %v400_v49 = vstv %s393_s25  ;;  %v403_v50 = vmax.f32 %v402_v48, %v1479_v40 }
  0x6f   : >> { %v398_v51 = vsub.f32 %v395_v47, %v397_v46  ;;  %v401_v52 = vmin.f32 %v400_v49, %v1482_v41 }
  0x71   : >> { %v399_v54 = vmax.f32 %v398_v51, 0.0  ;;  %v404_v55 = vsub.f32 %v401_v52, %v403_v50 }
  0x73   : >> { %v405_v56 = vmax.f32 %v404_v55, 0.0 }
  0x75   : >> { %v406_v58 = vmul.f32 %v405_v56, %v399_v54 }
  0x77   : >> { %v410_v59 = vsub.f32 %v409_v57, %v406_v58 }
  0x79   : >> { %v411_v60 = vmax.f32 %v410_v59, 1e-06 }
  0x7b   : >> { %1137 = vrcp.f32 %v411_v60 }
  0x84   : > { %376 = sbr.rel (!%p373_p9) target bundleno = 92 (0x5c), region = 107 }
  0x85   : >> { %v1138_v61 = vpop.eup %1137 }
  0x86   : >> { %v413_v62 = vmul.f32 %v1138_v61, %v406_v58 }
  0x88   : >> { %v414_v63 = vmax.f32 %v1323_v43, %v413_v62  }
  0x8a   : >> { %v1322_v43 = vmov %v414_v63   ;;  %v1330_v42 = vmov (%p373_p9), %v414_v63  }
  0x8b PF: > { %v419_v0 = vmul.f32 0.5, %v1448_v13  ;;  %v422_v1 = vmul.f32 0.5, %v1450_v14  ;;  %v434_v6 = vmul.f32 %v1450_v14, %v1448_v13  ;;  %v1516_v20 = vld [vmem:[%s1426_s29 + $0x28] sm:$0xff]  ;;  %v1525_v28 = vld [vmem:[%s1426_s29 + $0x30] sm:$0xff]  ;;  %vm502_vm0 = vcmp.eq.f32.partialorder %v1454_v16, 0.0  ;;  %v1536_v46 = vld [vmem:[%s1426_s29 + $0x40] sm:$0xff]  ;;  %v1331_v42 = vphi %v1329_v42, %v1330_v42  }
  0x8c   : > { %v494_v27 = vand.u32 2147483647, %v1516_v20  ;;  %v503_v35 = vsel %vm502_vm0, %v1516_v20, 0.0  ;;  %vm517_vm1 = vcmp.eq.f32.partialorder %v1454_v16, 1.0  ;;  %vm532_vm2 = vcmp.eq.f32.partialorder %v1454_v16, 2.0  ;;  %v1545_v55 = vld [vmem:[%s1426_s29 + $0x48] sm:$0xff] }
  0x8d   : > { %v420_v2 = vsub.f32 %v1444_v8, %v419_v0  ;;  %v421_v3 = vadd.f32 %v419_v0, %v1444_v8  ;;  %v423_v4 = vsub.f32 %v1446_v12, %v422_v1  ;;  %v424_v5 = vadd.f32 %v1446_v12, %v422_v1  ;;  %v1548_v60 = vld [vmem:[%s1426_s29 + $0x50] sm:$0xff]  ;;  %v1552_v62 = vld [vmem:[%s1426_s29 + $0x58] sm:$0xff] }
  0x8e   : > { %v435_v14 = vadd.f32 %v434_v6, %v1460_v29  ;;  %v495_v33 = vsub.f32 0.0, %v494_v27  ;;  %v518_v45 = vsel %vm517_vm1, %v1525_v28, 0.0  ;;  %v539_v54 = vand.u32 2147483647, %v1536_v46 }
  0x8f   : > { %v425_v9 = vmin.f32 %v1476_v39, %v421_v3  ;;  %v426_v10 = vmax.f32 %v1473_v38, %v420_v2  ;;  %v429_v11 = vmin.f32 %v1482_v41, %v424_v5  ;;  %v430_v19 = vmax.f32 %v1479_v40, %v423_v4 }
  0x90   : > { %v445_v21 = vmax.f32 %v1476_v39, %v421_v3  ;;  %v446_v22 = vmin.f32 %v1473_v38, %v420_v2  ;;  %v449_v23 = vmax.f32 %v1482_v41, %v424_v5  ;;  %v450_v13 = vmin.f32 %v1479_v40, %v423_v4  ;;  %v1531_v39 = vld [vmem:[%s1426_s29 + $0x38] sm:$0xff]  ;;  %v1556_v3 = vld [vmem:[%s1426_s29 + $0x60] sm:$0xff] }
  0x91   : > { %v427_v24 = vsub.f32 %v425_v9, %v426_v10  ;;  %v431_v25 = vsub.f32 %v429_v11, %v430_v19  ;;  %v509_v38 = vand.u32 2147483647, %v1525_v28  ;;  %v496_v40 = vmul.f32 1.442695, %v495_v33  ;;  %v1561_v19 = vld [vmem:[%s1426_s29 + $0x68] sm:$0xff] }
  0x92   : > { %v447_v26 = vsub.f32 %v445_v21, %v446_v22  ;;  %v451_v32 = vsub.f32 %v449_v23, %v450_v13  ;;  %v519_v47 = vadd.f32 %v518_v45, %v503_v35  ;;  %v524_v48 = vand.u32 2147483647, %v1531_v39  ;;  %v1577_v45 = vld [vmem:[%s1426_s29 + $0x78] sm:$0xff] }
  0x93   : > { %v428_v30 = vmax.f32 %v427_v24, 0.0  ;;  %v432_v31 = vmax.f32 %v431_v25, 0.0  ;;  %v510_v44 = vsub.f32 0.0, %v509_v38  ;;  %1141 = vpow2.f32 %v496_v40 }
  0x94   : > { %v448_v29 = vmax.f32 %v447_v26, 0.0  ;;  %v452_v43 = vmax.f32 %v451_v32, 0.0  ;;  %v533_v51 = vsel %vm532_vm2, %v1531_v39, 0.0  ;;  %v525_v52 = vsub.f32 0.0, %v524_v48 }
  0x95   : > { %v433_v34 = vmul.f32 %v432_v31, %v428_v30  ;;  %v511_v50 = vmul.f32 1.442695, %v510_v44  ;;  %v1541_v53 = vadd.f32 %v533_v51, %v519_v47  ;;  %v540_v59 = vsub.f32 0.0, %v539_v54  ;;  %v1567_v31 = vld [vmem:[%s1426_s29 + $0x70] sm:$0xff] }
  0x96   : > { %v453_v56 = vmul.f32 %v448_v29, %v448_v29  ;;  %v454_v57 = vmul.f32 %v452_v43, %v452_v43  ;;  %v526_v58 = vmul.f32 1.442695, %v525_v52  ;;  %v554_v61 = vand.u32 2147483647, %v1545_v55 }
  0x97   : > { %v436_v41 = vsub.f32 %v435_v14, %v433_v34  ;;  %v541_v63 = vmul.f32 1.442695, %v540_v59  ;;  %v569_v2 = vand.u32 2147483647, %v1548_v60  ;;  %v584_v4 = vand.u32 2147483647, %v1552_v62 }
  0x98   : > { %v455_v0 = vadd.f32 %v454_v57, %v453_v56  ;;  %v555_v1 = vsub.f32 0.0, %v554_v61  ;;  %v599_v11 = vand.u32 2147483647, %v1556_v3  ;;  %v614_v14 = vand.u32 2147483647, %v1561_v19 }
  0x99   : > { %v437_v49 = vmax.f32 %v436_v41, 1e-06  ;;  %v570_v6 = vsub.f32 0.0, %v569_v2  ;;  %v585_v10 = vsub.f32 0.0, %v584_v4  ;;  %v440_v29 = vsub.f32 %v1468_v36, %v1444_v8 }
  0x9a   : > { %v556_v5 = vmul.f32 1.442695, %v555_v1  ;;  %v456_v21 = vmax.f32 %v455_v0, 1e-06  ;;  %v600_v25 = vsub.f32 0.0, %v599_v11  ;;  %v615_v38 = vsub.f32 0.0, %v614_v14 }
  0x9b   : > { %1143 = vrcp.f32 %v437_v49  ;;  %v571_v23 = vmul.f32 1.442695, %v570_v6  ;;  %v586_v24 = vmul.f32 1.442695, %v585_v10  ;;  %v441_v40 = vsub.f32 %v1470_v37, %v1446_v12  ;;  %v1581_v37 = vld [vmem:[%s1426_s29 + $0x80] sm:$0xff]  ;;  %v1588_v1 = vld [vmem:[%s1426_s29 + $0x88] sm:$0xff] }
  0x9c   : > { %1145 = vpow2.f32 %v511_v50  ;;  %v601_v35 = vmul.f32 1.442695, %v600_v25  ;;  %v629_v44 = vand.u32 2147483647, %v1567_v31  ;;  %v616_v49 = vmul.f32 1.442695, %v615_v38 }
  0x9d   : > { %1147 = vpow2.f32 %v526_v58  ;;  %v1142_v9 = vpop.eup %1141  ;;  %v442_v36 = vmul.f32 %v440_v29, %v440_v29  ;;  %v443_v51 = vmul.f32 %v441_v40, %v441_v40  ;;  %v644_v12 = vand.u32 2147483647, %v1577_v45 }
  0x9e   : > { %1149 = vpow2.f32 %v541_v63  ;;  %v498_v22 = vadd.f32 1.0, %v1142_v9  ;;  %v630_v50 = vsub.f32 0.0, %v629_v44  ;;  %v492_v52 = vmax.f32 %v1516_v20, 0.0 }
  0x9f   : > { %1151 = vpow2.f32 %v556_v5  ;;  %vm415_vm3 = vcmp.le.f32.partialorder %v1331_v42, 0.5  ;;  %v507_v57 = vmax.f32 %v1525_v28, 0.0  ;;  %v645_v63 = vsub.f32 0.0, %v644_v12 }
  0xa0   : > { %1153 = vlog2.f32 %v498_v22  ;;  %v631_v58 = vmul.f32 1.442695, %v630_v50  ;;  %v659_v0 = vand.u32 2147483647, %v1581_v37  ;;  %v444_v4 = vadd.f32 %v443_v51, %v442_v36 }
  0xa1   : > { %1155 = vpow2.f32 %v571_v23  ;;  %v1336_v6 = vmov 0.0   ;;  %v522_v10 = vmax.f32 %v1531_v39, 0.0  ;;  %vm547_vm4 = vcmp.eq.f32.partialorder %v1454_v16, 3.0 }
  0xa2   : > { %1157 = vrcp.f32 %v456_v21  ;;  %v1027_v42 = vsel %vm415_vm3, 1.0, %v1336_v6  ;;  %v674_v11 = vand.u32 2147483647, %v1588_v1  ;;  %v646_v23 = vmul.f32 1.442695, %v645_v63 }
  0xa3   : > { %1159 = vpow2.f32 %v586_v24  ;;  %v660_v24 = vsub.f32 0.0, %v659_v0  ;;  %vm468_vm5 = vcmp.eq.f32.partialorder %v1452_v15, 1.0  ;;  %v1599_v39 = vmul.f32 %v1027_v42, %v1456_v17  ;;  %v1622_v0 = vld [vmem:[%s1426_s29 + $0xa0] sm:$0xff] }
  0xa4   : > { %v537_v38 = vmax.f32 %v1536_v46, 0.0  ;;  %v548_v29 = vsel %vm547_vm4, %v1536_v46, 0.0  ;;  %vm562_vm6 = vcmp.eq.f32.partialorder %v1454_v16, 4.0  ;;  %v675_v40 = vsub.f32 0.0, %v674_v11 }
  0xa5   : > { %v1144_v13 = vpop.eup %1143  ;;  %v549_v36 = vadd.f32 %v548_v29, %v1541_v53  ;;  %v552_v51 = vmax.f32 %v1545_v55, 0.0  ;;  %vm577_vm7 = vcmp.eq.f32.partialorder %v1454_v16, 5.0  ;;  %vm592_vm9 = vcmp.eq.f32.partialorder %v1454_v16, 6.0 }
  0xa6   : > { %v1146_v26 = vpop.eup %1145  ;;  %v1564_v27 = vmul.f32 %v1144_v13, %v433_v34  ;;  %v719_v11 = vand.u32 2147483647, %v1622_v0  ;;  %vm811_vm11 = vcmp.gt.f32.partialorder %v1599_v39, 0.0  ;;  %v593_v39 = vsel %vm592_vm9, %v1552_v62, 0.0 }
  0xa7   : > { %v513_v30 = vadd.f32 1.0, %v1146_v26  ;;  %v1148_v32 = vpop.eup %1147  ;;  %v1595_v26 = vld [vmem:[%s1426_s29 + $0x90] sm:$0xff]  ;;  %vm607_vm12 = vcmp.eq.f32.partialorder %v1454_v16, 7.0  ;;  %vm622_vm14 = vcmp.eq.f32.partialorder %v1454_v16, 8.0  ;;  %vm637_vm15 = vcmp.eq.f32.partialorder %v1454_v16, 9.0 }
  0xa8   : > { %v460_v33 = vsub.f32 1.0, %v1564_v27  ;;  %v528_v34 = vadd.f32 1.0, %v1148_v32  ;;  %v1150_v41 = vpop.eup %1149  ;;  %v689_v17 = vand.u32 2147483647, %v1595_v26  ;;  %vm652_vm0 = vcmp.eq.f32.partialorder %v1454_v16, 10.0 }
  0xa9   : > { %1161 = vlog2.f32 %v513_v30  ;;  %v543_v47 = vadd.f32 1.0, %v1150_v41  ;;  %v1152_v8 = vpop.eup %1151  ;;  %vm667_vm1 = vcmp.eq.f32.partialorder %v1454_v16, 11.0  ;;  %vm682_vm2 = vcmp.eq.f32.partialorder %v1454_v16, 12.0 }
  0xaa   : > { %v461_v43 = vadd.f32 %v1458_v18, %v460_v33  ;;  %1163 = vlog2.f32 %v528_v34  ;;  %v558_v54 = vadd.f32 1.0, %v1152_v8  ;;  %v1154_v56 = vpop.eup %1153  ;;  %vm697_vm3 = vcmp.eq.f32.partialorder %v1454_v16, 13.0 }
  0xab   : > { %1165 = vpow2.f32 %v601_v35  ;;  %v1156_v59 = vpop.eup %1155  ;;  %v500_v61 = vmul.f32 0.6931472, %v1154_v56  ;;  %vm712_vm4 = vcmp.eq.f32.partialorder %v1454_v16, 14.0  ;;  %vm787_vm9 = vcmp.eq.f32.partialorder %v1454_v16, 19.0 }
  0xac   : > { %v462_v48 = vmax.f32 %v461_v43, 1e-06  ;;  %1167 = vlog2.f32 %v543_v47  ;;  %v1158_v2 = vpop.eup %1157  ;;  %v573_v5 = vadd.f32 1.0, %v1156_v59  ;;  %v661_v43 = vmul.f32 1.442695, %v660_v24 }
  0xad   : > { %v1160_v20 = vpop.eup %1159  ;;  %v501_v9 = vadd.f32 %v500_v61, %v492_v52  ;;  %v458_v13 = vmul.f32 %v1158_v2, %v444_v4  ;;  %v567_v61 = vmax.f32 %v1548_v60, 0.0 }
  0xae   : > { %1169 = vrcp.f32 %v462_v48  ;;  %v588_v14 = vadd.f32 1.0, %v1160_v20 }
  0xaf   : > { %1171 = vpow2.f32 %v616_v49  ;;  %v508_v21 = vadd.f32 %v507_v57, %v501_v9  ;;  %v459_v44 = vsub.f32 %v1564_v27, %v458_v13  ;;  %v1610_v49 = vld [vmem:[%s1426_s29 + $0x98] sm:$0xff]  ;;  %v563_v27 = vsel %vm562_vm6, %v1545_v55, 0.0 }
  0xb0   : > { %1173 = vlog2.f32 %v558_v54  ;;  %v676_v54 = vmul.f32 1.442695, %v675_v40  ;;  %v690_v57 = vsub.f32 0.0, %v689_v17  ;;  %v564_v4 = vadd.f32 %v563_v27, %v549_v36  ;;  %v1670_v27 = vld [vmem:[%s1426_s29 + $0xb8] sm:$0xff] }
  0xb1   : > { %1175 = vpow2.f32 %v631_v58  ;;  %v704_v58 = vand.u32 2147483647, %v1610_v49  ;;  %v578_v55 = vsel %vm577_vm7, %v1548_v60, 0.0  ;;  %vm742_vm6 = vcmp.eq.f32.partialorder %v1454_v16, 16.0 }
  0xb2   : > { %1177 = vlog2.f32 %v573_v5  ;;  %v579_v24 = vadd.f32 %v578_v55, %v564_v4  ;;  %vm757_vm7 = vcmp.eq.f32.partialorder %v1454_v16, 17.0 }
  0xb3   : > { %v1162_v28 = vpop.eup %1161  ;;  %1179 = vpow2.f32 %v646_v23 }
  0xb4   : > { %v515_v22 = vmul.f32 0.6931472, %v1162_v28  ;;  %v1164_v25 = vpop.eup %1163  ;;  %1181 = vlog2.f32 %v588_v14  ;;  %v691_v28 = vmul.f32 1.442695, %v690_v57  ;;  %v594_v17 = vadd.f32 %v593_v39, %v579_v24 }
  0xb5   : > { %v1166_v30 = vpop.eup %1165  ;;  %v530_v33 = vmul.f32 0.6931472, %v1164_v25  ;;  %1183 = vpow2.f32 %v661_v43  ;;  %v1637_v25 = vld [vmem:[%s1426_s29 + $0xa8] sm:$0xff] }
  0xb6   : > { %v516_v32 = vadd.f32 %v515_v22, %v508_v21  ;;  %v1168_v35 = vpop.eup %1167  ;;  %v603_v48 = vadd.f32 1.0, %v1166_v30  ;;  %v582_v30 = vmax.f32 %v1552_v62, 0.0  ;;  %v734_v40 = vand.u32 2147483647, %v1637_v25 }
  0xb7   : > { %v545_v46 = vmul.f32 0.6931472, %v1168_v35 }
  0xb8   : > { %v1170_v34 = vpop.eup %1169  ;;  %v523_v41 = vadd.f32 %v522_v10, %v516_v32  ;;  %1185 = vlog2.f32 %v603_v48  ;;  %v705_v10 = vsub.f32 0.0, %v704_v58  ;;  %v623_v58 = vsel %vm622_vm14, %v1561_v19, 0.0 }
  0xb9   : > { %v464_v47 = vmul.f32 %v1170_v34, %v1458_v18  ;;  %v1172_v50 = vpop.eup %1171  ;;  %1187 = vpow2.f32 %v676_v54  ;;  %v1657_v34 = vld [vmem:[%s1426_s29 + $0xb0] sm:$0xff]  ;;  %vm840_vm14 = vcmask 1044480  }
  0xba   : > { %v531_v8 = vadd.f32 %v530_v33, %v523_v41  ;;  %v1174_v12 = vpop.eup %1173  ;;  %v618_v63 = vadd.f32 1.0, %v1172_v50  ;;  %v706_v35 = vmul.f32 1.442695, %v705_v10  ;;  %v608_v50 = vsel %vm607_vm12, %v1556_v3, 0.0 }
  0xbb   : > { %v465_v52 = vmul.f32 %v1458_v18, %v464_v47  ;;  %v1176_v59 = vpop.eup %1175  ;;  %v560_v2 = vmul.f32 0.6931472, %v1174_v12  ;;  %v609_v57 = vadd.f32 %v608_v50, %v594_v17  ;;  %vm836_vm12 = vcmask 1042432  }
  0xbc   : > { %v538_v56 = vadd.f32 %v537_v38, %v531_v8  ;;  %v1178_v5 = vpop.eup %1177  ;;  %1189 = vlog2.f32 %v618_v63  ;;  %v633_v21 = vadd.f32 1.0, %v1176_v59  ;;  %v720_v38 = vsub.f32 0.0, %v719_v11 }
  0xbd   : > { %v466_v53 = vsub.f32 %v459_v44, %v465_v52  ;;  %v1180_v22 = vpop.eup %1179  ;;  %v575_v15 = vmul.f32 0.6931472, %v1178_v5  ;;  %1191 = vpow2.f32 %v691_v28  ;;  %v597_v44 = vmax.f32 %v1556_v3, 0.0 }
  0xbe   : > { %v546_v18 = vadd.f32 %v545_v46, %v538_v56  ;;  %v1182_v13 = vpop.eup %1181  ;;  %1193 = vlog2.f32 %v633_v21  ;;  %v648_v29 = vadd.f32 1.0, %v1180_v22  ;;  %v735_v8 = vsub.f32 0.0, %v734_v40 }
  0xbf   : > { %vm467_vm8 = vcmp.eq.f32.partialorder %v466_v53, %v466_v53  ;;  %v472_v20 = vsub.f32 1.0, %v466_v53  ;;  %v1184_v41 = vpop.eup %1183  ;;  %v590_v43 = vmul.f32 0.6931472, %v1182_v13  ;;  %1195 = vpow2.f32 %v706_v35 }
  0xc0   : > { %vm1628_vm10 = vmand %vm468_vm5, %vm467_vm8  ;;  %v553_v9 = vadd.f32 %v552_v51, %v546_v18  ;;  %v721_v36 = vmul.f32 1.442695, %v720_v38  ;;  %v749_v51 = vand.u32 2147483647, %v1657_v34  ;;  %1197 = vlog2.f32 %v648_v29 }
  0xc1   : > { %v473_v60 = vsel %vm1628_vm10, %v472_v20, 0.0  ;;  %v1642_v14 = vsel %vm1628_vm10, 1.0, %v1336_v6  ;;  %vm1651_vm13 = vmor %vm811_vm11, %vm1628_vm10  ;;  %v663_v52 = vadd.f32 1.0, %v1184_v41  ;;  %v612_v56 = vmax.f32 %v1561_v19, 0.0 }
  0xc2   : > { %474 = vadd.xlane.f32.xlu0 %v473_v60  ;;  %v561_v23 = vadd.f32 %v560_v2, %v553_v9  ;;  %v1186_v47 = vpop.eup %1185  ;;  %v1049_v48 = vsel %vm1651_vm13, 1.0, %v1336_v6  ;;  %v736_v59 = vmul.f32 1.442695, %v735_v8  ;;  %1199 = vpow2.f32 %v721_v36  ;;  %v1679_v2 = vld [vmem:[%s1426_s29 + $0xc0] sm:$0xff] }
  0xc3   : > { %v1188_v12 = vpop.eup %1187  ;;  %v605_v54 = vmul.f32 0.6931472, %v1186_v47  ;;  %v764_v63 = vand.u32 2147483647, %v1670_v27  ;;  %1201 = vlog2.f32 %v663_v52  ;;  %v624_v9 = vadd.f32 %v623_v58, %v609_v57 }
  0xc4   : > { %v568_v33 = vadd.f32 %v567_v61, %v561_v23  ;;  %v750_v61 = vsub.f32 0.0, %v749_v51  ;;  %v678_v18 = vadd.f32 1.0, %v1188_v12  ;;  %v627_v28 = vmax.f32 %v1567_v31, 0.0 }
  0xc5   : > { %v638_v19 = vsel %vm637_vm15, %v1567_v31, 0.0  ;;  %1203 = vpow2.f32 %v736_v59  ;;  %v765_v60 = vsub.f32 0.0, %v764_v63  ;;  %v779_v21 = vand.u32 2147483647, %v1679_v2 }
  0xc6   : > { %482 = vadd.xlane.f32.xlu0 %v1642_v14  ;;  %v576_v62 = vadd.f32 %v575_v15, %v568_v33  ;;  %v1190_v3 = vpop.eup %1189  ;;  %v751_v11 = vmul.f32 1.442695, %v750_v61  ;;  %1205 = vlog2.f32 %v678_v18  ;;  %v803_v13 = vand.u32 2147483647, %v1442_v7 }
  0xc7   : > { %v1192_v4 = vpop.eup %1191  ;;  %v620_v5 = vmul.f32 0.6931472, %v1190_v3  ;;  %v639_v39 = vadd.f32 %v638_v19, %v624_v9  ;;  %v642_v33 = vmax.f32 %v1577_v45, 0.0  ;;  %v766_v35 = vmul.f32 1.442695, %v765_v60 }
  0xc8   : > { %v583_v46 = vadd.f32 %v582_v30, %v576_v62  ;;  %v1194_v20 = vpop.eup %1193  ;;  %v693_v22 = vadd.f32 1.0, %v1192_v4  ;;  %1207 = vpow2.f32 %v751_v11  ;;  %v780_v38 = vsub.f32 0.0, %v779_v21 }
  0xc9   : > { %v1196_v23 = vpop.eup %1195  ;;  %v635_v24 = vmul.f32 0.6931472, %v1194_v20  ;;  %v653_v29 = vsel %vm652_vm0, %v1577_v45, 0.0  ;;  %v804_v17 = vsub.f32 0.0, %v803_v13  ;;  %v657_v47 = vmax.f32 %v1581_v37, 0.0 }
  0xca   : > { %824 = vadd.xlane.f32.xlu0 %v1049_v48  ;;  %v591_v6 = vadd.f32 %v590_v43, %v583_v46  ;;  %v1198_v30 = vpop.eup %1197  ;;  %1209 = vlog2.f32 %v693_v22  ;;  %v708_v40 = vadd.f32 1.0, %v1196_v23  ;;  %v654_v50 = vadd.f32 %v653_v29, %v639_v39 }
  0xcb   : > { %v650_v43 = vmul.f32 0.6931472, %v1198_v30  ;;  %1211 = vpow2.f32 %v766_v35  ;;  %v781_v8 = vmul.f32 1.442695, %v780_v38  ;;  %v668_v36 = vsel %vm667_vm1, %v1581_v37, 0.0 }
  0xcc   : > { %v598_v53 = vadd.f32 %v597_v44, %v591_v6  ;;  %v1200_v41 = vpop.eup %1199  ;;  %1213 = vlog2.f32 %v708_v40  ;;  %v805_v52 = vmul.f32 1.442695, %v804_v17  ;;  %v672_v3 = vmax.f32 %v1588_v1, 0.0 }
  0xcd   : > { %v1202_v44 = vpop.eup %1201  ;;  %v723_v45 = vadd.f32 1.0, %v1200_v41  ;;  %1215 = vpow2.f32 %v781_v8  ;;  %v683_v57 = vsel %vm682_vm2, %v1588_v1, 0.0  ;;  %v687_v4 = vmax.f32 %v1595_v26, 0.0 }
  0xce   : > { %v606_v55 = vadd.f32 %v605_v54, %v598_v53  ;;  %v665_v12 = vmul.f32 0.6931472, %v1202_v44  ;;  %v702_v11 = vmax.f32 %v1610_v49, 0.0  ;;  %v713_v60 = vsel %vm712_vm4, %v1610_v49, 0.0 }
  0xcf   : > { %v1204_v46 = vpop.eup %1203  ;;  %1217 = vlog2.f32 %v723_v45  ;;  %vm727_vm5 = vcmp.eq.f32.partialorder %v1454_v16, 15.0  ;;  %v717_v39 = vmax.f32 %v1622_v0, 0.0  ;;  %v758_v8 = vsel %vm757_vm7, %v1657_v34, 0.0 }
  0xd0   : > { %v613_v10 = vadd.f32 %v612_v56, %v606_v55  ;;  %v1206_v6 = vpop.eup %1205  ;;  %v669_v56 = vadd.f32 %v668_v36, %v654_v50  ;;  %v738_v58 = vadd.f32 1.0, %v1204_v46  ;;  %1219 = vpow2.f32 %v805_v52 }
  0xd1   : > { %v680_v37 = vmul.f32 0.6931472, %v1206_v6  ;;  %v698_v55 = vsel %vm697_vm3, %v1595_v26, 0.0  ;;  %v747_v50 = vmax.f32 %v1657_v34, 0.0  ;;  %vm772_vm8 = vcmp.eq.f32.partialorder %v1454_v16, 18.0 }
  0xd2   : > { %v621_v15 = vadd.f32 %v620_v5, %v613_v10  ;;  %v1208_v59 = vpop.eup %1207  ;;  %v684_v18 = vadd.f32 %v683_v57, %v669_v56  ;;  %1221 = vlog2.f32 %v738_v58  ;;  %v773_v52 = vsel %vm772_vm8, %v1670_v27, 0.0 }
  0xd3   : > { %v753_v5 = vadd.f32 1.0, %v1208_v59  ;;  %v801_v34 = vmul.f32 %v1642_v14, %v1442_v7  ;;  %v777_v59 = vmax.f32 %v1679_v2, 0.0  ;;  %v1337_v14 = vmov 0  }
  0xd4   : > { %v628_v31 = vadd.f32 %v627_v28, %v621_v15  ;;  %v1210_v61 = vpop.eup %1209  ;;  %v699_v10 = vadd.f32 %v698_v55, %v684_v18  ;;  %1139 = vset.pattern.permute.xlu1 %v1337_v14  ;;  %1140 = vset.pattern.permute.xlu0 %v1337_v14  ;;  %vm834_vm11 = vcmask 1041408  }
  0xd5   : > { %v1212_v20 = vpop.eup %1211  ;;  %v695_v1 = vmul.f32 0.6931472, %v1210_v61  ;;  %1223 = vlog2.f32 %v753_v5 }
  0xd6   : > { %v636_v62 = vadd.f32 %v635_v24, %v628_v31  ;;  %v1214_v28 = vpop.eup %1213  ;;  %v768_v21 = vadd.f32 1.0, %v1212_v20  ;;  %v714_v30 = vadd.f32 %v713_v60, %v699_v10 }
  0xd7   : > { %v1216_v22 = vpop.eup %1215  ;;  %v710_v15 = vmul.f32 0.6931472, %v1214_v28 }
  0xd8   : > { %v643_v48 = vadd.f32 %v642_v33, %v636_v62  ;;  %v728_v33 = vsel %vm727_vm5, %v1622_v0, 0.0  ;;  %1225 = vlog2.f32 %v768_v21  ;;  %v783_v31 = vadd.f32 1.0, %v1216_v22 }
  0xd9   : > { %v1218_v26 = vpop.eup %1217  ;;  %v729_v41 = vadd.f32 %v728_v33, %v714_v30  ;;  %v732_v62 = vmax.f32 %v1637_v25, 0.0 }
  0xda   : > { %v651_v51 = vadd.f32 %v650_v43, %v643_v48  ;;  %v1220_v24 = vpop.eup %1219  ;;  %v725_v38 = vmul.f32 0.6931472, %v1218_v26  ;;  %v743_v43 = vsel %vm742_vm6, %v1637_v25, 0.0  ;;  %1227 = vlog2.f32 %v783_v31 }
  0xdb   : > { %v807_v29 = vadd.f32 1.0, %v1220_v24  ;;  %v744_v48 = vadd.f32 %v743_v43, %v729_v41 }
  0xdc   : > { %v658_v54 = vadd.f32 %v657_v47, %v651_v51  ;;  %v1222_v49 = vpop.eup %1221 }
  0xdd   : > { %v740_v44 = vmul.f32 0.6931472, %v1222_v49  ;;  %1229 = vlog2.f32 %v807_v29  ;;  %v759_v25 = vadd.f32 %v758_v8, %v744_v48 }
  0xde   : > { %v666_v53 = vadd.f32 %v665_v12, %v658_v54  ;;  %v762_v12 = vmax.f32 %v1670_v27, 0.0 }
  0xdf   : > { %v1224_v0 = vpop.eup %1223  ;;  %v774_v58 = vadd.f32 %v773_v52, %v759_v25 }
  0xe0   : > { %v673_v63 = vadd.f32 %v672_v3, %v666_v53  ;;  %v755_v36 = vmul.f32 0.6931472, %v1224_v0  ;;  %v800_v3 = vmax.f32 %v1442_v7, 0.0 }
  0xe2   : > { %v681_v9 = vadd.f32 %v680_v37, %v673_v63  ;;  %v1226_v45 = vpop.eup %1225  ;;  %v788_v37 = vsel %vm787_vm9, %v1679_v2, 0.0  ;;  %v802_v27 = vsub.f32 %v800_v3, %v801_v34 }
  0xe3   : > { %v770_v54 = vmul.f32 0.6931472, %v1226_v45 }
  0xe4   : > { %v688_v19 = vadd.f32 %v687_v4, %v681_v9  ;;  %v1228_v56 = vpop.eup %1227  ;;  %v789_v4 = vadd.f32 %v788_v37, %v774_v58 }
  0xe5   : > { %v785_v63 = vmul.f32 0.6931472, %v1228_v56 }
  0xe6   : > { %v696_v23 = vadd.f32 %v695_v1, %v688_v19 }
  0xe7   : > { %v1230_v53 = vpop.eup %1229 }
  0xe8   : > { %v703_v13 = vadd.f32 %v702_v11, %v696_v23  ;;  %v809_v55 = vmul.f32 0.6931472, %v1230_v53 }
  0xea   : > { %v711_v35 = vadd.f32 %v710_v15, %v703_v13  ;;  %v810_v20 = vadd.f32 %v809_v55, %v802_v27 }
  0xec   : > { %v718_v40 = vadd.f32 %v717_v39, %v711_v35  ;;  %v813_v7 = vsel %vm1651_vm13, %v810_v20, 0.0  ;;  %vm838_vm13 = vcmask 1043456  }
  0xee   : > { %v726_v17 = vadd.f32 %v725_v38, %v718_v40 }
  0xf0   : > { %v733_v47 = vadd.f32 %v732_v62, %v726_v17 }
  0xf2   : > { %v741_v46 = vadd.f32 %v740_v44, %v733_v47 }
  0xf4   : > { %v748_v51 = vadd.f32 %v747_v50, %v741_v46 }
  0xf6   : > { %v756_v6 = vadd.f32 %v755_v36, %v748_v51 }
  0xf8   : > { %v763_v57 = vadd.f32 %v762_v12, %v756_v6 }
  0xfa   : > { %v771_v61 = vadd.f32 %v770_v54, %v763_v57 }
  0xfc   : > { %v778_v18 = vadd.f32 %v777_v59, %v771_v61 }
  0xfe   : > { %v786_v16 = vadd.f32 %v785_v63, %v778_v18 }
 0x100   : > { %v790_v5 = vsub.f32 %v786_v16, %v789_v4 }
 0x102   : > { %v791_v9 = vsel %vm1628_vm10, %v790_v5, 0.0  ;;  %vm832_vm10 = vcmask 1040384  }
 0x103   : > { %792 = vadd.xlane.f32.xlu1 %v791_v9 }
 0x107   : > { %814 = vadd.xlane.f32.xlu1 %v813_v7 }
 0x14f   : > { %v475_v2 = vpop.xlane.xlu0 %474 }
 0x150   : > { %v476_v28 = vrot.slane %v475_v2, 4 }
 0x152   : > { %v477_v11 = vadd.f32 %v476_v28, %v475_v2 }
 0x153   : > { %v483_v1 = vpop.xlane.xlu0 %482 }
 0x154   : > { %v484_v19 = vrot.slane %v483_v1, 4  ;;  %v478_v22 = vrot.slane %v477_v11, 2 }
 0x156   : > { %v485_v60 = vadd.f32 %v484_v19, %v483_v1  ;;  %v479_v24 = vadd.f32 %v478_v22, %v477_v11 }
 0x157   : > { %v825_v10 = vpop.xlane.xlu0 %824 }
 0x158   : > { %v826_v21 = vrot.slane %v825_v10, 4  ;;  %v486_v23 = vrot.slane %v485_v60, 2  ;;  %v480_v35 = vrot.slane %v479_v24, 1 }
 0x15a   : > { %v827_v42 = vadd.f32 %v826_v21, %v825_v10  ;;  %v487_v32 = vadd.f32 %v486_v23, %v485_v60  ;;  %v481_v43 = vadd.f32 %v480_v35, %v479_v24 }
 0x15c   : > { %v828_v30 = vrot.slane %v827_v42, 2  ;;  %v488_v38 = vrot.slane %v487_v32, 1 }
 0x15e   : > { %v829_v40 = vadd.f32 %v828_v30, %v827_v42  ;;  %v489_v17 = vadd.f32 %v488_v38, %v487_v32 }
 0x160   : > { %v830_v0 = vrot.slane %v829_v40, 1  ;;  %v833_v8 = vsel %vm832_vm10, %v481_v43, %v489_v17 }
 0x162   : > { %v831_v46 = vadd.f32 %v830_v0, %v829_v40 }
 0x190   : > { %v793_v15 = vpop.xlane.xlu1 %792 }
 0x191   : > { %v794_v26 = vrot.slane %v793_v15, 4 }
 0x193   : > { %v795_v13 = vadd.f32 %v794_v26, %v793_v15 }
 0x194   : > { %v815_v39 = vpop.xlane.xlu1 %814 }
 0x195   : > { %v796_v33 = vrot.slane %v795_v13, 2  ;;  %v816_v31 = vrot.slane %v815_v39, 4 }
 0x197   : > { %v797_v49 = vadd.f32 %v796_v33, %v795_v13  ;;  %v817_v29 = vadd.f32 %v816_v31, %v815_v39 }
 0x199   : > { %v798_v41 = vrot.slane %v797_v49, 1  ;;  %v818_v62 = vrot.slane %v817_v29, 2 }
 0x19b   : > { %v819_v44 = vadd.f32 %v818_v62, %v817_v29  ;;  %v799_v47 = vadd.f32 %v798_v41, %v797_v49 }
 0x19d   : > { %v820_v48 = vrot.slane %v819_v44, 1  ;;  %v835_v36 = vsel %vm834_vm11, %v833_v8, %v799_v47 }
 0x19f   : > { %v821_v50 = vadd.f32 %v820_v48, %v819_v44 }
 0x1a1   : > { %v837_v45 = vsel %vm836_vm12, %v835_v36, %v821_v50 }
 0x1a2   : > { %v839_v51 = vsel %vm838_vm13, %v837_v45, %v831_v46 }
 0x1a3   : > { %v841_v25 = vsel %vm840_vm14, %v839_v51, 0.0 }
 0x1a4   : > { %844 = vperm.xlu1 %1139, %v841_v25  }
 0x223   : > { %v845_v12 = vpop.permute.xlu1 %844 }
 0x224   : > { %847 = vst [vmem:[%s1438_s21] sm:$0xff] %v845_v12 }
 0x225 PF: > { %s30_s13 = sadd.s32 1, %s1319_s13   ;;  %s1749_s10 = smov %s1311_s12 }
 0x226   : > { %p27_p10 = scmp.ge.s32.totalorder %s30_s13, 8   ;;  %s1750_s11 = smov %s1315_s2 }
 0x227   : > { %s1751_s12 = smov %s1754_s14  ;;  %s1752_s2 = smov %s1758_s15 }
 0x228   :  { %29 = sbr.rel (!%p27_p10) target bundleno = 38 (0x26), region = 118 }

</bundles_post_ra>
